<compile_context>
chip_gen: v7x
topology: tpu7x:2x2x1
jax: 0.10.0
libtpu: 0.0.40
codegen_flags: <defaults>
</compile_context>

<pallas_src>
import math

import jax
import jax.numpy as jnp
from jax import lax
from jax.experimental import pallas as pl
from jax.experimental.pallas import tpu as pltpu

N_COS = 64
EPS = 1e-5
VEC_W = 256  # lane width of each packed parameter-vector row

# Row indices into the packed (18, VEC_W) parameter-vector array.
(HEAD_B, COS_B, B1, B2, B3, B4, B5, B6,
 G1, G2, G3, G4, G5,
 BE1, BE2, BE3, BE4, BE5) = range(18)


def _bn_train(x, gamma, beta):
    # Classic two-pass training-mode BatchNorm1d (used by the pure-JAX reference).
    mean = jnp.mean(x, axis=0, keepdims=True)
    var = jnp.mean((x - mean) ** 2, axis=0, keepdims=True)
    return gamma * (x - mean) * lax.rsqrt(var + EPS) + beta


def iqn_kernel(x_ref, cos_ref, vecs_ref,
               hw_ref, cw_ref,
               w1_ref, w2_ref, w3_ref, w4_ref, w5_ref, w6_ref,
               q_ref):
    f32 = jnp.float32
    B = x_ref.shape[0]
    rows = cos_ref.shape[0]          # B * N
    N = rows // B
    L = hw_ref.shape[1]
    A = w6_ref.shape[1]
    inv_rows = 1.0 / rows

    def vec(idx, width):
        # Static slice of one packed (1, width) parameter vector.
        return vecs_ref[idx:idx + 1, 0:width]

    def bn_relu(h, g_idx, be_idx):
        # Single-pass BN stats: var = E[h^2] - mean^2 (one sweep over h).
        f = h.shape[1]
        s1 = jnp.sum(h, axis=0, keepdims=True)
        s2 = jnp.sum(h * h, axis=0, keepdims=True)
        mean = s1 * inv_rows
        var = jnp.maximum(s2 * inv_rows - mean * mean, 0.0)
        y = (h - mean) * lax.rsqrt(var + EPS)
        return jnp.maximum(vec(g_idx, f) * y + vec(be_idx, f), 0.0)

    # state embedding: relu(head(input))            -> (B, L)
    x = jnp.maximum(
        jnp.dot(x_ref[...], hw_ref[...], preferred_element_type=f32)
        + vec(HEAD_B, L), 0.0)

    # cosine embedding: relu(cos_embedding(cos))    -> (B*N, L)
    cos_x = jnp.maximum(
        jnp.dot(cos_ref[...], cw_ref[...], preferred_element_type=f32)
        + vec(COS_B, L), 0.0)

    # broadcast x over the N tau samples in-kernel (no one-hot matmul):
    # (B,1,L) * (B,N,L) -> (B*N, L)
    h = (x.reshape(B, 1, L) * cos_x.reshape(B, N, L)).reshape(rows, L)

    # ff_1 .. ff_5 with fused-stat BatchNorm + relu
    h = jnp.dot(h, w1_ref[...], preferred_element_type=f32) + vec(B1, w1_ref.shape[1])
    h = bn_relu(h, G1, BE1)

    h = jnp.dot(h, w2_ref[...], preferred_element_type=f32) + vec(B2, w2_ref.shape[1])
    h = bn_relu(h, G2, BE2)

    h = jnp.dot(h, w3_ref[...], preferred_element_type=f32) + vec(B3, w3_ref.shape[1])
    h = bn_relu(h, G3, BE3)

    h = jnp.dot(h, w4_ref[...], preferred_element_type=f32) + vec(B4, w4_ref.shape[1])
    h = bn_relu(h, G4, BE4)

    h = jnp.dot(h, w5_ref[...], preferred_element_type=f32) + vec(B5, w5_ref.shape[1])
    h = bn_relu(h, G5, BE5)

    # mean over the N tau samples BEFORE ff_6 (mean commutes with Linear):
    f5 = w5_ref.shape[1]
    h_mean = jnp.sum(h.reshape(B, N, f5), axis=1) * (1.0 / N)      # (B, f5)

    # ff_6 on B rows only -> quantile mean q (B, A)
    q_ref[...] = (jnp.dot(h_mean, w6_ref[...], preferred_element_type=f32)
                  + vec(B6, A))


def _xavier_uniform(key, fan_in, fan_out):
    limit = math.sqrt(6.0 / (fan_in + fan_out))
    return jax.random.uniform(key, (fan_in, fan_out), jnp.float32, -limit, limit)


def _bias(key, fan_in, fan_out):
    bound = 1.0 / math.sqrt(fan_in)
    return jax.random.uniform(key, (1, fan_out), jnp.float32, -bound, bound)


def init_params(key, state_size, action_size, layer_size=128):
    dims = [
        ("head", state_size, layer_size),
        ("cos", N_COS, layer_size),
        ("ff1", layer_size, layer_size),
        ("ff2", layer_size, 196),
        ("ff3", 196, 128),
        ("ff4", 128, 64),
        ("ff5", 64, 32),
        ("ff6", 32, action_size),
    ]
    params = {}
    for name, fi, fo in dims:
        key, kw, kb = jax.random.split(key, 3)
        params[name + "_w"] = _xavier_uniform(kw, fi, fo)
        params[name + "_b"] = _bias(kb, fi, fo)
    # BatchNorm affine params as freshly constructed: gamma=1, beta=0
    for name, fo in [("bn1", layer_size), ("bn2", 196), ("bn3", 128),
                     ("bn4", 64), ("bn5", 32)]:
        params[name + "_g"] = jnp.ones((1, fo), jnp.float32)
        params[name + "_b"] = jnp.zeros((1, fo), jnp.float32)
    return params


def pack_params(params):
    """One-time repack of parameters into kernel-ready operands.

    * ff_2 width is zero-padded 196 -> 256 (and the matching ff_3 rows), which
      is value-preserving through BN/relu (zero columns stay exactly zero).
    * All 18 (1, f) vectors are packed into one (18, 256) array so they move
      to VMEM in a single DMA.
    """
    pad2 = (-params["ff2_w"].shape[1]) % 128          # 196 -> 256
    w2p = jnp.pad(params["ff2_w"], ((0, 0), (0, pad2)))
    b2p = jnp.pad(params["ff2_b"], ((0, 0), (0, pad2)))
    g2p = jnp.pad(params["bn2_g"], ((0, 0), (0, pad2)))
    be2p = jnp.pad(params["bn2_b"], ((0, 0), (0, pad2)))
    w3p = jnp.pad(params["ff3_w"], ((0, pad2), (0, 0)))

    def row(v):
        return jnp.pad(v, ((0, 0), (0, VEC_W - v.shape[1])))

    vecs = jnp.concatenate([
        row(params["head_b"]), row(params["cos_b"]),
        row(params["ff1_b"]), row(b2p), row(params["ff3_b"]),
        row(params["ff4_b"]), row(params["ff5_b"]), row(params["ff6_b"]),
        row(params["bn1_g"]), row(g2p), row(params["bn3_g"]),
        row(params["bn4_g"]), row(params["bn5_g"]),
        row(params["bn1_b"]), row(be2p), row(params["bn3_b"]),
        row(params["bn4_b"]), row(params["bn5_b"]),
    ], axis=0)

    return dict(
        vecs=vecs,
        head_w=params["head_w"], cos_w=params["cos_w"],
        w1=params["ff1_w"], w2=w2p, w3=w3p,
        w4=params["ff4_w"], w5=params["ff5_w"], w6=params["ff6_w"],
    )


def iqn_forward(x, cos, packed, batch_size, n_tau, action_size):
    """x: (B, state_size), cos: (B, N, 64) -> q: (B, action_size)"""
    B, N = batch_size, n_tau
    cos_flat = cos.reshape(B * N, N_COS)

    operands = [
        x, cos_flat, packed["vecs"],
        packed["head_w"], packed["cos_w"],
        packed["w1"], packed["w2"], packed["w3"],
        packed["w4"], packed["w5"], packed["w6"],
    ]
    vmem_spec = pl.BlockSpec(memory_space=pltpu.MemorySpace.VMEM)
    return pl.pallas_call(
        iqn_kernel,
        out_shape=jax.ShapeDtypeStruct((B, action_size), jnp.float32),
        in_specs=[vmem_spec] * len(operands),
        out_specs=vmem_spec,
    )(*operands)


def iqn_reference(x, cos, params, batch_size, n_tau, action_size):
    """Pure-JAX reference of the PyTorch forward (training-mode BN)."""
    B, N = batch_size, n_tau
    relu = lambda v: jnp.maximum(v, 0.0)
    xh = relu(x @ params["head_w"] + params["head_b"])                 # (B, L)
    cos_x = relu(cos.reshape(B * N, N_COS) @ params["cos_w"]
                 + params["cos_b"]).reshape(B, N, -1)                  # (B, N, L)
    h = (xh[:, None, :] * cos_x).reshape(B * N, -1)
    for i in range(1, 6):
        h = h @ params[f"ff{i}_w"] + params[f"ff{i}_b"]
        h = relu(_bn_train(h, params[f"bn{i}_g"], params[f"bn{i}_b"]))
    out = h @ params["ff6_w"] + params["ff6_b"]
    return out.reshape(B, N, action_size).mean(axis=1)


if __name__ == "__main__":
    state_size = 16
    action_size = 4
    batch_size = 2
    layer_size = 128
    N = 8

    key = jax.random.PRNGKey(0)
    k_params, k_x, k_tau = jax.random.split(key, 3)

    params = init_params(k_params, state_size, action_size, layer_size)
    packed = pack_params(params)   # one-time repack (pad + pack small vectors)

    x = jax.random.normal(k_x, (batch_size, state_size), jnp.float32)
    # calc_cos: taus ~ U(0,1), pis = pi * arange(64)
    taus = jax.random.uniform(k_tau, (batch_size, N, 1), jnp.float32)
    pis = (jnp.pi * jnp.arange(N_COS, dtype=jnp.float32)).reshape(1, 1, N_COS)
    cos = jnp.cos(taus * pis)                                          # (B, N, 64)

    q = iqn_forward(x, cos, packed, batch_size, N, action_size)
    q = jax.block_until_ready(q)

    q_ref = iqn_reference(x, cos, params, batch_size, N, action_size)
    assert q.shape == (batch_size, action_size)
    assert jnp.allclose(q, q_ref, atol=1e-4, rtol=1e-4), "mismatch vs reference"

    print("KERNEL_OK")
</pallas_src>

<mosaic_0001>
module attributes {stable_mosaic.version = 11 : i64} {
  func.func @iqn_kernel(%arg0: memref<2x16xf32, #tpu.memory_space<vmem>>, %arg1: memref<16x64xf32, #tpu.memory_space<vmem>>, %arg2: memref<18x256xf32, #tpu.memory_space<vmem>>, %arg3: memref<16x128xf32, #tpu.memory_space<vmem>>, %arg4: memref<64x128xf32, #tpu.memory_space<vmem>>, %arg5: memref<128x128xf32, #tpu.memory_space<vmem>>, %arg6: memref<128x256xf32, #tpu.memory_space<vmem>>, %arg7: memref<256x128xf32, #tpu.memory_space<vmem>>, %arg8: memref<128x64xf32, #tpu.memory_space<vmem>>, %arg9: memref<64x32xf32, #tpu.memory_space<vmem>>, %arg10: memref<32x4xf32, #tpu.memory_space<vmem>>, %arg11: memref<2x4xf32, #tpu.memory_space<vmem>>) attributes {dimension_semantics = [], scalar_prefetch = 0 : i64, scratch_operands = 0 : i64, tpu.core_type = #tpu.core_type<tc>} {
    %c0 = arith.constant 0 : index
    %c0_0 = arith.constant 0 : index
    %0 = vector.load %arg0[%c0, %c0_0] : memref<2x16xf32, #tpu.memory_space<vmem>>, vector<2x16xf32>
    %c0_1 = arith.constant 0 : index
    %c0_2 = arith.constant 0 : index
    %1 = vector.load %arg3[%c0_1, %c0_2] : memref<16x128xf32, #tpu.memory_space<vmem>>, vector<16x128xf32>
    %cst = arith.constant dense<0.000000e+00> : vector<2x128xf32>
    %2 = tpu.matmul %0, %1, %cst {dimension_numbers = #tpu.dot_dimension_numbers<[1], [0], [0], [1], [0, 0, 1, 1], [], []>} : vector<2x16xf32>, vector<16x128xf32>, vector<2x128xf32> -> vector<2x128xf32>
    %c0_3 = arith.constant 0 : index
    %c0_4 = arith.constant 0 : index
    %3 = vector.load %arg2[%c0_3, %c0_4] : memref<18x256xf32, #tpu.memory_space<vmem>>, vector<1x128xf32>
    %4 = vector.broadcast %3 : vector<1x128xf32> to vector<2x128xf32>
    %5 = arith.addf %2, %4 : vector<2x128xf32>
    %cst_5 = arith.constant 0.000000e+00 : f32
    %6 = vector.broadcast %cst_5 : f32 to vector<2x128xf32>
    %7 = arith.maximumf %5, %6 : vector<2x128xf32>
    %c0_6 = arith.constant 0 : index
    %c0_7 = arith.constant 0 : index
    %8 = vector.load %arg1[%c0_6, %c0_7] : memref<16x64xf32, #tpu.memory_space<vmem>>, vector<16x64xf32>
    %c0_8 = arith.constant 0 : index
    %c0_9 = arith.constant 0 : index
    %9 = vector.load %arg4[%c0_8, %c0_9] : memref<64x128xf32, #tpu.memory_space<vmem>>, vector<64x128xf32>
    %cst_10 = arith.constant dense<0.000000e+00> : vector<16x128xf32>
    %10 = tpu.matmul %8, %9, %cst_10 {dimension_numbers = #tpu.dot_dimension_numbers<[1], [0], [0], [1], [0, 0, 1, 1], [], []>} : vector<16x64xf32>, vector<64x128xf32>, vector<16x128xf32> -> vector<16x128xf32>
    %c1 = arith.constant 1 : index
    %c0_11 = arith.constant 0 : index
    %11 = vector.load %arg2[%c1, %c0_11] : memref<18x256xf32, #tpu.memory_space<vmem>>, vector<1x128xf32>
    %12 = vector.broadcast %11 : vector<1x128xf32> to vector<16x128xf32>
    %13 = arith.addf %10, %12 : vector<16x128xf32>
    %cst_12 = arith.constant 0.000000e+00 : f32
    %14 = vector.broadcast %cst_12 : f32 to vector<16x128xf32>
    %15 = arith.maximumf %13, %14 : vector<16x128xf32>
    %16 = vector.shape_cast %7 : vector<2x128xf32> to vector<2x1x128xf32>
    %17 = vector.shape_cast %15 : vector<16x128xf32> to vector<2x8x128xf32>
    %18 = vector.broadcast %16 : vector<2x1x128xf32> to vector<2x8x128xf32>
    %19 = arith.mulf %18, %17 : vector<2x8x128xf32>
    %20 = vector.shape_cast %19 : vector<2x8x128xf32> to vector<16x128xf32>
    %c0_13 = arith.constant 0 : index
    %c0_14 = arith.constant 0 : index
    %21 = vector.load %arg5[%c0_13, %c0_14] : memref<128x128xf32, #tpu.memory_space<vmem>>, vector<128x128xf32>
    %cst_15 = arith.constant dense<0.000000e+00> : vector<16x128xf32>
    %22 = tpu.matmul %20, %21, %cst_15 {dimension_numbers = #tpu.dot_dimension_numbers<[1], [0], [0], [1], [0, 0, 1, 1], [], []>} : vector<16x128xf32>, vector<128x128xf32>, vector<16x128xf32> -> vector<16x128xf32>
    %c2 = arith.constant 2 : index
    %c0_16 = arith.constant 0 : index
    %23 = vector.load %arg2[%c2, %c0_16] : memref<18x256xf32, #tpu.memory_space<vmem>>, vector<1x128xf32>
    %24 = vector.broadcast %23 : vector<1x128xf32> to vector<16x128xf32>
    %25 = arith.addf %22, %24 : vector<16x128xf32>
    %cst_17 = arith.constant dense<0.000000e+00> : vector<128xf32>
    %26 = vector.multi_reduction <add>, %25, %cst_17 [0] : vector<16x128xf32> to vector<128xf32>
    %27 = vector.shape_cast %26 : vector<128xf32> to vector<1x128xf32>
    %28 = arith.mulf %25, %25 : vector<16x128xf32>
    %cst_18 = arith.constant dense<0.000000e+00> : vector<128xf32>
    %29 = vector.multi_reduction <add>, %28, %cst_18 [0] : vector<16x128xf32> to vector<128xf32>
    %30 = vector.shape_cast %29 : vector<128xf32> to vector<1x128xf32>
    %cst_19 = arith.constant 6.250000e-02 : f32
    %31 = vector.broadcast %cst_19 : f32 to vector<1x128xf32>
    %32 = arith.mulf %27, %31 : vector<1x128xf32>
    %cst_20 = arith.constant 6.250000e-02 : f32
    %33 = vector.broadcast %cst_20 : f32 to vector<1x128xf32>
    %34 = arith.mulf %30, %33 : vector<1x128xf32>
    %35 = arith.mulf %32, %32 : vector<1x128xf32>
    %36 = arith.subf %34, %35 : vector<1x128xf32>
    %cst_21 = arith.constant 0.000000e+00 : f32
    %37 = vector.broadcast %cst_21 : f32 to vector<1x128xf32>
    %38 = arith.maximumf %36, %37 : vector<1x128xf32>
    %39 = vector.broadcast %32 : vector<1x128xf32> to vector<16x128xf32>
    %40 = arith.subf %25, %39 : vector<16x128xf32>
    %cst_22 = arith.constant 9.99999974E-6 : f32
    %41 = vector.broadcast %cst_22 : f32 to vector<1x128xf32>
    %42 = arith.addf %38, %41 : vector<1x128xf32>
    %43 = math.rsqrt %42 : vector<1x128xf32>
    %44 = vector.broadcast %43 : vector<1x128xf32> to vector<16x128xf32>
    %45 = arith.mulf %40, %44 : vector<16x128xf32>
    %c8 = arith.constant 8 : index
    %c0_23 = arith.constant 0 : index
    %46 = vector.load %arg2[%c8, %c0_23] : memref<18x256xf32, #tpu.memory_space<vmem>>, vector<1x128xf32>
    %47 = vector.broadcast %46 : vector<1x128xf32> to vector<16x128xf32>
    %48 = arith.mulf %47, %45 : vector<16x128xf32>
    %c13 = arith.constant 13 : index
    %c0_24 = arith.constant 0 : index
    %49 = vector.load %arg2[%c13, %c0_24] : memref<18x256xf32, #tpu.memory_space<vmem>>, vector<1x128xf32>
    %50 = vector.broadcast %49 : vector<1x128xf32> to vector<16x128xf32>
    %51 = arith.addf %48, %50 : vector<16x128xf32>
    %cst_25 = arith.constant 0.000000e+00 : f32
    %52 = vector.broadcast %cst_25 : f32 to vector<16x128xf32>
    %53 = arith.maximumf %51, %52 : vector<16x128xf32>
    %c0_26 = arith.constant 0 : index
    %c0_27 = arith.constant 0 : index
    %54 = vector.load %arg6[%c0_26, %c0_27] : memref<128x256xf32, #tpu.memory_space<vmem>>, vector<128x256xf32>
    %cst_28 = arith.constant dense<0.000000e+00> : vector<16x256xf32>
    %55 = tpu.matmul %53, %54, %cst_28 {dimension_numbers = #tpu.dot_dimension_numbers<[1], [0], [0], [1], [0, 0, 1, 1], [], []>} : vector<16x128xf32>, vector<128x256xf32>, vector<16x256xf32> -> vector<16x256xf32>
    %c3 = arith.constant 3 : index
    %c0_29 = arith.constant 0 : index
    %56 = vector.load %arg2[%c3, %c0_29] : memref<18x256xf32, #tpu.memory_space<vmem>>, vector<1x256xf32>
    %57 = vector.broadcast %56 : vector<1x256xf32> to vector<16x256xf32>
    %58 = arith.addf %55, %57 : vector<16x256xf32>
    %cst_30 = arith.constant dense<0.000000e+00> : vector<256xf32>
    %59 = vector.multi_reduction <add>, %58, %cst_30 [0] : vector<16x256xf32> to vector<256xf32>
    %60 = vector.shape_cast %59 : vector<256xf32> to vector<1x256xf32>
    %61 = arith.mulf %58, %58 : vector<16x256xf32>
    %cst_31 = arith.constant dense<0.000000e+00> : vector<256xf32>
    %62 = vector.multi_reduction <add>, %61, %cst_31 [0] : vector<16x256xf32> to vector<256xf32>
    %63 = vector.shape_cast %62 : vector<256xf32> to vector<1x256xf32>
    %cst_32 = arith.constant 6.250000e-02 : f32
    %64 = vector.broadcast %cst_32 : f32 to vector<1x256xf32>
    %65 = arith.mulf %60, %64 : vector<1x256xf32>
    %cst_33 = arith.constant 6.250000e-02 : f32
    %66 = vector.broadcast %cst_33 : f32 to vector<1x256xf32>
    %67 = arith.mulf %63, %66 : vector<1x256xf32>
    %68 = arith.mulf %65, %65 : vector<1x256xf32>
    %69 = arith.subf %67, %68 : vector<1x256xf32>
    %cst_34 = arith.constant 0.000000e+00 : f32
    %70 = vector.broadcast %cst_34 : f32 to vector<1x256xf32>
    %71 = arith.maximumf %69, %70 : vector<1x256xf32>
    %72 = vector.broadcast %65 : vector<1x256xf32> to vector<16x256xf32>
    %73 = arith.subf %58, %72 : vector<16x256xf32>
    %cst_35 = arith.constant 9.99999974E-6 : f32
    %74 = vector.broadcast %cst_35 : f32 to vector<1x256xf32>
    %75 = arith.addf %71, %74 : vector<1x256xf32>
    %76 = math.rsqrt %75 : vector<1x256xf32>
    %77 = vector.broadcast %76 : vector<1x256xf32> to vector<16x256xf32>
    %78 = arith.mulf %73, %77 : vector<16x256xf32>
    %c9 = arith.constant 9 : index
    %c0_36 = arith.constant 0 : index
    %79 = vector.load %arg2[%c9, %c0_36] : memref<18x256xf32, #tpu.memory_space<vmem>>, vector<1x256xf32>
    %80 = vector.broadcast %79 : vector<1x256xf32> to vector<16x256xf32>
    %81 = arith.mulf %80, %78 : vector<16x256xf32>
    %c14 = arith.constant 14 : index
    %c0_37 = arith.constant 0 : index
    %82 = vector.load %arg2[%c14, %c0_37] : memref<18x256xf32, #tpu.memory_space<vmem>>, vector<1x256xf32>
    %83 = vector.broadcast %82 : vector<1x256xf32> to vector<16x256xf32>
    %84 = arith.addf %81, %83 : vector<16x256xf32>
    %cst_38 = arith.constant 0.000000e+00 : f32
    %85 = vector.broadcast %cst_38 : f32 to vector<16x256xf32>
    %86 = arith.maximumf %84, %85 : vector<16x256xf32>
    %c0_39 = arith.constant 0 : index
    %c0_40 = arith.constant 0 : index
    %87 = vector.load %arg7[%c0_39, %c0_40] : memref<256x128xf32, #tpu.memory_space<vmem>>, vector<256x128xf32>
    %cst_41 = arith.constant dense<0.000000e+00> : vector<16x128xf32>
    %88 = tpu.matmul %86, %87, %cst_41 {dimension_numbers = #tpu.dot_dimension_numbers<[1], [0], [0], [1], [0, 0, 1, 1], [], []>} : vector<16x256xf32>, vector<256x128xf32>, vector<16x128xf32> -> vector<16x128xf32>
    %c4 = arith.constant 4 : index
    %c0_42 = arith.constant 0 : index
    %89 = vector.load %arg2[%c4, %c0_42] : memref<18x256xf32, #tpu.memory_space<vmem>>, vector<1x128xf32>
    %90 = vector.broadcast %89 : vector<1x128xf32> to vector<16x128xf32>
    %91 = arith.addf %88, %90 : vector<16x128xf32>
    %cst_43 = arith.constant dense<0.000000e+00> : vector<128xf32>
    %92 = vector.multi_reduction <add>, %91, %cst_43 [0] : vector<16x128xf32> to vector<128xf32>
    %93 = vector.shape_cast %92 : vector<128xf32> to vector<1x128xf32>
    %94 = arith.mulf %91, %91 : vector<16x128xf32>
    %cst_44 = arith.constant dense<0.000000e+00> : vector<128xf32>
    %95 = vector.multi_reduction <add>, %94, %cst_44 [0] : vector<16x128xf32> to vector<128xf32>
    %96 = vector.shape_cast %95 : vector<128xf32> to vector<1x128xf32>
    %cst_45 = arith.constant 6.250000e-02 : f32
    %97 = vector.broadcast %cst_45 : f32 to vector<1x128xf32>
    %98 = arith.mulf %93, %97 : vector<1x128xf32>
    %cst_46 = arith.constant 6.250000e-02 : f32
    %99 = vector.broadcast %cst_46 : f32 to vector<1x128xf32>
    %100 = arith.mulf %96, %99 : vector<1x128xf32>
    %101 = arith.mulf %98, %98 : vector<1x128xf32>
    %102 = arith.subf %100, %101 : vector<1x128xf32>
    %cst_47 = arith.constant 0.000000e+00 : f32
    %103 = vector.broadcast %cst_47 : f32 to vector<1x128xf32>
    %104 = arith.maximumf %102, %103 : vector<1x128xf32>
    %105 = vector.broadcast %98 : vector<1x128xf32> to vector<16x128xf32>
    %106 = arith.subf %91, %105 : vector<16x128xf32>
    %cst_48 = arith.constant 9.99999974E-6 : f32
    %107 = vector.broadcast %cst_48 : f32 to vector<1x128xf32>
    %108 = arith.addf %104, %107 : vector<1x128xf32>
    %109 = math.rsqrt %108 : vector<1x128xf32>
    %110 = vector.broadcast %109 : vector<1x128xf32> to vector<16x128xf32>
    %111 = arith.mulf %106, %110 : vector<16x128xf32>
    %c10 = arith.constant 10 : index
    %c0_49 = arith.constant 0 : index
    %112 = vector.load %arg2[%c10, %c0_49] : memref<18x256xf32, #tpu.memory_space<vmem>>, vector<1x128xf32>
    %113 = vector.broadcast %112 : vector<1x128xf32> to vector<16x128xf32>
    %114 = arith.mulf %113, %111 : vector<16x128xf32>
    %c15 = arith.constant 15 : index
    %c0_50 = arith.constant 0 : index
    %115 = vector.load %arg2[%c15, %c0_50] : memref<18x256xf32, #tpu.memory_space<vmem>>, vector<1x128xf32>
    %116 = vector.broadcast %115 : vector<1x128xf32> to vector<16x128xf32>
    %117 = arith.addf %114, %116 : vector<16x128xf32>
    %cst_51 = arith.constant 0.000000e+00 : f32
    %118 = vector.broadcast %cst_51 : f32 to vector<16x128xf32>
    %119 = arith.maximumf %117, %118 : vector<16x128xf32>
    %c0_52 = arith.constant 0 : index
    %c0_53 = arith.constant 0 : index
    %120 = vector.load %arg8[%c0_52, %c0_53] : memref<128x64xf32, #tpu.memory_space<vmem>>, vector<128x64xf32>
    %cst_54 = arith.constant dense<0.000000e+00> : vector<16x64xf32>
    %121 = tpu.matmul %119, %120, %cst_54 {dimension_numbers = #tpu.dot_dimension_numbers<[1], [0], [0], [1], [0, 0, 1, 1], [], []>} : vector<16x128xf32>, vector<128x64xf32>, vector<16x64xf32> -> vector<16x64xf32>
    %c5 = arith.constant 5 : index
    %c0_55 = arith.constant 0 : index
    %122 = vector.load %arg2[%c5, %c0_55] : memref<18x256xf32, #tpu.memory_space<vmem>>, vector<1x64xf32>
    %123 = vector.broadcast %122 : vector<1x64xf32> to vector<16x64xf32>
    %124 = arith.addf %121, %123 : vector<16x64xf32>
    %cst_56 = arith.constant dense<0.000000e+00> : vector<64xf32>
    %125 = vector.multi_reduction <add>, %124, %cst_56 [0] : vector<16x64xf32> to vector<64xf32>
    %126 = vector.shape_cast %125 : vector<64xf32> to vector<1x64xf32>
    %127 = arith.mulf %124, %124 : vector<16x64xf32>
    %cst_57 = arith.constant dense<0.000000e+00> : vector<64xf32>
    %128 = vector.multi_reduction <add>, %127, %cst_57 [0] : vector<16x64xf32> to vector<64xf32>
    %129 = vector.shape_cast %128 : vector<64xf32> to vector<1x64xf32>
    %cst_58 = arith.constant 6.250000e-02 : f32
    %130 = vector.broadcast %cst_58 : f32 to vector<1x64xf32>
    %131 = arith.mulf %126, %130 : vector<1x64xf32>
    %cst_59 = arith.constant 6.250000e-02 : f32
    %132 = vector.broadcast %cst_59 : f32 to vector<1x64xf32>
    %133 = arith.mulf %129, %132 : vector<1x64xf32>
    %134 = arith.mulf %131, %131 : vector<1x64xf32>
    %135 = arith.subf %133, %134 : vector<1x64xf32>
    %cst_60 = arith.constant 0.000000e+00 : f32
    %136 = vector.broadcast %cst_60 : f32 to vector<1x64xf32>
    %137 = arith.maximumf %135, %136 : vector<1x64xf32>
    %138 = vector.broadcast %131 : vector<1x64xf32> to vector<16x64xf32>
    %139 = arith.subf %124, %138 : vector<16x64xf32>
    %cst_61 = arith.constant 9.99999974E-6 : f32
    %140 = vector.broadcast %cst_61 : f32 to vector<1x64xf32>
    %141 = arith.addf %137, %140 : vector<1x64xf32>
    %142 = math.rsqrt %141 : vector<1x64xf32>
    %143 = vector.broadcast %142 : vector<1x64xf32> to vector<16x64xf32>
    %144 = arith.mulf %139, %143 : vector<16x64xf32>
    %c11 = arith.constant 11 : index
    %c0_62 = arith.constant 0 : index
    %145 = vector.load %arg2[%c11, %c0_62] : memref<18x256xf32, #tpu.memory_space<vmem>>, vector<1x64xf32>
    %146 = vector.broadcast %145 : vector<1x64xf32> to vector<16x64xf32>
    %147 = arith.mulf %146, %144 : vector<16x64xf32>
    %c16 = arith.constant 16 : index
    %c0_63 = arith.constant 0 : index
    %148 = vector.load %arg2[%c16, %c0_63] : memref<18x256xf32, #tpu.memory_space<vmem>>, vector<1x64xf32>
    %149 = vector.broadcast %148 : vector<1x64xf32> to vector<16x64xf32>
    %150 = arith.addf %147, %149 : vector<16x64xf32>
    %cst_64 = arith.constant 0.000000e+00 : f32
    %151 = vector.broadcast %cst_64 : f32 to vector<16x64xf32>
    %152 = arith.maximumf %150, %151 : vector<16x64xf32>
    %c0_65 = arith.constant 0 : index
    %c0_66 = arith.constant 0 : index
    %153 = vector.load %arg9[%c0_65, %c0_66] : memref<64x32xf32, #tpu.memory_space<vmem>>, vector<64x32xf32>
    %cst_67 = arith.constant dense<0.000000e+00> : vector<16x32xf32>
    %154 = tpu.matmul %152, %153, %cst_67 {dimension_numbers = #tpu.dot_dimension_numbers<[1], [0], [0], [1], [0, 0, 1, 1], [], []>} : vector<16x64xf32>, vector<64x32xf32>, vector<16x32xf32> -> vector<16x32xf32>
    %c6 = arith.constant 6 : index
    %c0_68 = arith.constant 0 : index
    %155 = vector.load %arg2[%c6, %c0_68] : memref<18x256xf32, #tpu.memory_space<vmem>>, vector<1x32xf32>
    %156 = vector.broadcast %155 : vector<1x32xf32> to vector<16x32xf32>
    %157 = arith.addf %154, %156 : vector<16x32xf32>
    %cst_69 = arith.constant dense<0.000000e+00> : vector<32xf32>
    %158 = vector.multi_reduction <add>, %157, %cst_69 [0] : vector<16x32xf32> to vector<32xf32>
    %159 = vector.shape_cast %158 : vector<32xf32> to vector<1x32xf32>
    %160 = arith.mulf %157, %157 : vector<16x32xf32>
    %cst_70 = arith.constant dense<0.000000e+00> : vector<32xf32>
    %161 = vector.multi_reduction <add>, %160, %cst_70 [0] : vector<16x32xf32> to vector<32xf32>
    %162 = vector.shape_cast %161 : vector<32xf32> to vector<1x32xf32>
    %cst_71 = arith.constant 6.250000e-02 : f32
    %163 = vector.broadcast %cst_71 : f32 to vector<1x32xf32>
    %164 = arith.mulf %159, %163 : vector<1x32xf32>
    %cst_72 = arith.constant 6.250000e-02 : f32
    %165 = vector.broadcast %cst_72 : f32 to vector<1x32xf32>
    %166 = arith.mulf %162, %165 : vector<1x32xf32>
    %167 = arith.mulf %164, %164 : vector<1x32xf32>
    %168 = arith.subf %166, %167 : vector<1x32xf32>
    %cst_73 = arith.constant 0.000000e+00 : f32
    %169 = vector.broadcast %cst_73 : f32 to vector<1x32xf32>
    %170 = arith.maximumf %168, %169 : vector<1x32xf32>
    %171 = vector.broadcast %164 : vector<1x32xf32> to vector<16x32xf32>
    %172 = arith.subf %157, %171 : vector<16x32xf32>
    %cst_74 = arith.constant 9.99999974E-6 : f32
    %173 = vector.broadcast %cst_74 : f32 to vector<1x32xf32>
    %174 = arith.addf %170, %173 : vector<1x32xf32>
    %175 = math.rsqrt %174 : vector<1x32xf32>
    %176 = vector.broadcast %175 : vector<1x32xf32> to vector<16x32xf32>
    %177 = arith.mulf %172, %176 : vector<16x32xf32>
    %c12 = arith.constant 12 : index
    %c0_75 = arith.constant 0 : index
    %178 = vector.load %arg2[%c12, %c0_75] : memref<18x256xf32, #tpu.memory_space<vmem>>, vector<1x32xf32>
    %179 = vector.broadcast %178 : vector<1x32xf32> to vector<16x32xf32>
    %180 = arith.mulf %179, %177 : vector<16x32xf32>
    %c17 = arith.constant 17 : index
    %c0_76 = arith.constant 0 : index
    %181 = vector.load %arg2[%c17, %c0_76] : memref<18x256xf32, #tpu.memory_space<vmem>>, vector<1x32xf32>
    %182 = vector.broadcast %181 : vector<1x32xf32> to vector<16x32xf32>
    %183 = arith.addf %180, %182 : vector<16x32xf32>
    %cst_77 = arith.constant 0.000000e+00 : f32
    %184 = vector.broadcast %cst_77 : f32 to vector<16x32xf32>
    %185 = arith.maximumf %183, %184 : vector<16x32xf32>
    %186 = vector.shape_cast %185 : vector<16x32xf32> to vector<2x8x32xf32>
    %cst_78 = arith.constant dense<0.000000e+00> : vector<2x32xf32>
    %187 = vector.multi_reduction <add>, %186, %cst_78 [1] : vector<2x8x32xf32> to vector<2x32xf32>
    %cst_79 = arith.constant 1.250000e-01 : f32
    %188 = vector.broadcast %cst_79 : f32 to vector<2x32xf32>
    %189 = arith.mulf %187, %188 : vector<2x32xf32>
    %c0_80 = arith.constant 0 : index
    %c0_81 = arith.constant 0 : index
    %190 = vector.load %arg10[%c0_80, %c0_81] : memref<32x4xf32, #tpu.memory_space<vmem>>, vector<32x4xf32>
    %cst_82 = arith.constant dense<0.000000e+00> : vector<2x4xf32>
    %191 = tpu.matmul %189, %190, %cst_82 {dimension_numbers = #tpu.dot_dimension_numbers<[1], [0], [0], [1], [0, 0, 1, 1], [], []>} : vector<2x32xf32>, vector<32x4xf32>, vector<2x4xf32> -> vector<2x4xf32>
    %c7 = arith.constant 7 : index
    %c0_83 = arith.constant 0 : index
    %192 = vector.load %arg2[%c7, %c0_83] : memref<18x256xf32, #tpu.memory_space<vmem>>, vector<1x4xf32>
    %193 = vector.broadcast %192 : vector<1x4xf32> to vector<2x4xf32>
    %194 = arith.addf %191, %193 : vector<2x4xf32>
    %c0_84 = arith.constant 0 : index
    %c0_85 = arith.constant 0 : index
    %195 = vector.load %arg11[%c0_84, %c0_85] : memref<2x4xf32, #tpu.memory_space<vmem>>, vector<2x4xf32>
    tpu.vector_store %arg11[%c0_84, %c0_85], %194 {strides = array<i32>} : memref<2x4xf32, #tpu.memory_space<vmem>>, vector<2x4xf32>,
    return
  }
}

</mosaic_0001>

<bundles_post_ra>
// kernel: tpu_custom_call.1
= control target key start
LH: loop header
LB: loop body
LE: loop exit
PB: predicated region body
PF: predicated region fallthrough
CT: control target
= control target key end

     0   :  { %16 = vsyncpa [#allocation3], 0  ;;  %s2196_s0 = inlined_call_operand.vmem [shape: f32[2,16], index: 0, kind: input, shape index: {}]   ;;  %s2197_s1 = inlined_call_operand.hbm [shape: f32[16,64], index: 1, kind: input, shape index: {}]   ;;  %s2198_s2 = inlined_call_operand.hbm [shape: f32[18,256], index: 2, kind: input, shape index: {}]   ;;  %s2199_s3 = inlined_call_operand.hbm [shape: f32[16,128], index: 3, kind: input, shape index: {}]   ;;  %s2200_s4 = inlined_call_operand.hbm [shape: f32[64,128], index: 4, kind: input, shape index: {}]   ;;  %s2201_s5 = inlined_call_operand.hbm [shape: f32[128,128], index: 5, kind: input, shape index: {}]   ;;  %s2202_s6 = inlined_call_operand.vmem [shape: f32[128,256], index: 6, kind: input, shape index: {}]   ;;  %s2203_s7 = inlined_call_operand.hbm [shape: f32[256,128], index: 7, kind: input, shape index: {}]   ;;  %s2204_s8 = inlined_call_operand.vmem [shape: f32[128,64], index: 8, kind: input, shape index: {}]   ;;  %s2205_s9 = inlined_call_operand.vmem [shape: f32[64,32], index: 9, kind: input, shape index: {}]   ;;  %s2206_s10 = inlined_call_operand.vmem [shape: f32[32,4], index: 10, kind: input, shape index: {}]   ;;  %s2207_s11 = inlined_call_operand.hbm [shape: f32[2,4], index: 11, kind: output, shape index: {}]  }
   0x1   :  { %17 = vsyncpa [#allocation6], 0 }
   0x2   :  { %18 = vsyncpa [#allocation9], 0 }
   0x3   :  { %19 = vsyncpa [#allocation12], 0 }
   0x4   :  { %20 = vsyncpa [#allocation4], 0  ;;  %s1786_s17 = smov [#allocation5]   ;;  %s1622_s21 = scalar_lea.hbm %s2198_s2, 768 }
   0x5   :  { %s40_s18 = sshll.u32 %s1786_s17, 4  ;;  %p1623_p0 = scmp.ne.s32.totalorder %s2198_s2, %s1622_s21  ;;  %s41_s18 = int_to_ptr.vmem [resolvable:$true] %s40_s18 }
   0x6   :  { %p1626_p1 = scmp.lt.u32.totalorder %s1622_s21, %s2198_s2 }
   0x8   :  { %p1628_p2 = pnand %p1626_p1, %p1623_p0 }
   0xa   :  { %1631 = shalt.err (!%p1628_p2)
}
   0xb   :  { %s1632_s26 = scalar_lea.vmem %s41_s18, 768  ;;  %p1637_p4 = scmp.lt.s32.totalorder %s41_s18, %s41_s18 }
   0xc   :  { %p1633_p3 = scmp.ne.s32.totalorder %s41_s18, %s1632_s26  ;;  %p1638_p5 = scmp.lt.s32.totalorder %s1632_s26, %s1632_s26 }
   0xe   :  { %p1639_p6 = por %p1638_p5, %p1637_p4 }
  0x10   :  { %p1640_p7 = pnand %p1639_p6, %p1633_p3 }
  0x12   :  { %1643 = shalt.err (!%p1640_p7)
}
  0x13   :  { %s1787_s27 = smov 256   ;;  %s1788_s28 = smov 16  }
  0x14   :  { %46 = dma.hbm_to_vmem [thread:$0]  %s2198_s2, 768, %s41_s18, [#allocation6], %s1787_s27, %s1787_s27, %s1788_s28  }
  0x15   :  { %s1789_s12 = smov [#allocation8]   ;;  %s1790_s14 = smov [#allocation2]  }
  0x16   :  { %s64_s13 = sshll.u32 %s1789_s12, 4  ;;  %s28_s15 = sshll.u32 %s1790_s14, 4  ;;  %s65_s13 = int_to_ptr.vmem [resolvable:$true] %s64_s13  ;;  %s29_s15 = int_to_ptr.vmem [resolvable:$true] %s28_s15 }
  0x17   :  { %s1644_s19 = scalar_lea.hbm %s2200_s4, 1024 }
  0x18   :  { %p1645_p8 = scmp.ne.s32.totalorder %s2200_s4, %s1644_s19  ;;  %p1648_p9 = scmp.lt.u32.totalorder %s1644_s19, %s2200_s4 }
  0x1a   :  { %p1650_p10 = pnand %p1648_p9, %p1645_p8 }
  0x1c   :  { %1653 = shalt.err (!%p1650_p10)
}
  0x1d   :  { %s1654_s2 = scalar_lea.vmem %s65_s13, 1024  ;;  %p1659_p12 = scmp.lt.s32.totalorder %s65_s13, %s65_s13 }
  0x1e   :  { %p1655_p11 = scmp.ne.s32.totalorder %s65_s13, %s1654_s2  ;;  %p1660_p13 = scmp.lt.s32.totalorder %s1654_s2, %s1654_s2 }
  0x20   :  { %p1661_p0 = por %p1660_p13, %p1659_p12 }
  0x22   :  { %p1662_p1 = pnand %p1661_p0, %p1655_p11 }
  0x24   :  { %1665 = shalt.err (!%p1662_p1)
}
  0x25   :  { %s1791_s18 = smov 128   ;;  %s1792_s24 = smov 8  }
  0x26   :  { %70 = dma.hbm_to_vmem [thread:$0]  %s2200_s4, 1024, %s65_s13, [#allocation9], %s1791_s18, %s1791_s18, %s1792_s24  }
  0x27   :  { %s1666_s29 = scalar_lea.hbm %s2197_s1, 256 }
  0x28   :  { %p1667_p2 = scmp.ne.s32.totalorder %s2197_s1, %s1666_s29  ;;  %p1670_p3 = scmp.lt.u32.totalorder %s1666_s29, %s2197_s1 }
  0x2a   :  { %p1672_p4 = pnand %p1670_p3, %p1667_p2 }
  0x2c   :  { %1675 = shalt.err (!%p1672_p4)
}
  0x2d   :  { %s1676_s17 = scalar_lea.vmem %s29_s15, 256  ;;  %p1681_p6 = scmp.lt.s32.totalorder %s29_s15, %s29_s15 }
  0x2e   :  { %p1677_p5 = scmp.ne.s32.totalorder %s29_s15, %s1676_s17  ;;  %p1682_p7 = scmp.lt.s32.totalorder %s1676_s17, %s1676_s17 }
  0x30   :  { %p1683_p8 = por %p1682_p7, %p1681_p6 }
  0x32   :  { %p1684_p9 = pnand %p1683_p8, %p1677_p5 }
  0x34   :  { %1687 = shalt.err (!%p1684_p9)
}
  0x35   :  { %34 = dma.hbm_to_vmem [thread:$0]  %s2197_s1, 256, %s29_s15, [#allocation3], %s1791_s18, %s1791_s18, %s1792_s24  }
  0x36   :  { %s1793_s19 = smov [#allocation7]   ;;  %s1794_s21 = smov [#allocation10]  }
  0x37   :  { %s52_s20 = sshll.u32 %s1793_s19, 4  ;;  %s76_s22 = sshll.u32 %s1794_s21, 4  ;;  %s53_s20 = int_to_ptr.vmem [resolvable:$true] %s52_s20  ;;  %s77_s22 = int_to_ptr.vmem [resolvable:$true] %s76_s22 }
  0x38   :  { %s1688_s25 = scalar_lea.hbm %s2199_s3, 256 }
  0x39   :  { %p1689_p10 = scmp.ne.s32.totalorder %s2199_s3, %s1688_s25  ;;  %p1692_p11 = scmp.lt.u32.totalorder %s1688_s25, %s2199_s3 }
  0x3b   :  { %p1694_p12 = pnand %p1692_p11, %p1689_p10 }
  0x3d   :  { %1697 = shalt.err (!%p1694_p12)
}
  0x3e   :  { %s1698_s1 = scalar_lea.vmem %s53_s20, 256  ;;  %p1703_p0 = scmp.lt.s32.totalorder %s53_s20, %s53_s20 }
  0x3f   :  { %p1699_p13 = scmp.ne.s32.totalorder %s53_s20, %s1698_s1  ;;  %p1704_p1 = scmp.lt.s32.totalorder %s1698_s1, %s1698_s1 }
  0x41   :  { %p1705_p2 = por %p1704_p1, %p1703_p0 }
  0x43   :  { %p1706_p3 = pnand %p1705_p2, %p1699_p13 }
  0x45   :  { %1709 = shalt.err (!%p1706_p3)
}
  0x46   :  { %58 = dma.hbm_to_vmem [thread:$0]  %s2199_s3, 256, %s53_s20, [#allocation6], %s1791_s18, %s1791_s18, %s1792_s24  }
  0x47   :  { %s1710_s16 = scalar_lea.hbm %s2201_s5, 2048 }
  0x48   :  { %p1711_p4 = scmp.ne.s32.totalorder %s2201_s5, %s1710_s16  ;;  %p1714_p5 = scmp.lt.u32.totalorder %s1710_s16, %s2201_s5 }
  0x4a   :  { %p1716_p6 = pnand %p1714_p5, %p1711_p4 }
  0x4c   :  { %1719 = shalt.err (!%p1716_p6)
}
  0x4d   :  { %s1720_s21 = scalar_lea.vmem %s77_s22, 2048  ;;  %p1725_p8 = scmp.lt.s32.totalorder %s77_s22, %s77_s22 }
  0x4e   :  { %p1721_p7 = scmp.ne.s32.totalorder %s77_s22, %s1720_s21  ;;  %p1726_p9 = scmp.lt.s32.totalorder %s1720_s21, %s1720_s21 }
  0x50   :  { %p1727_p10 = por %p1726_p9, %p1725_p8 }
  0x52   :  { %p1728_p11 = pnand %p1727_p10, %p1721_p7 }
  0x54   :  { %1731 = shalt.err (!%p1728_p11)
}
  0x55   :  { %82 = dma.hbm_to_vmem [thread:$0]  %s2201_s5, 2048, %s77_s22, [#allocation9], %s1791_s18, %s1791_s18, %s1792_s24  }
  0x56   :  { %s1795_s23 = smov [#allocation11]   ;;  %s1732_s27 = scalar_lea.hbm %s2203_s7, 4096 }
  0x57   :  { %s90_s2 = sshll.u32 %s1795_s23, 4  ;;  %p1733_p12 = scmp.ne.s32.totalorder %s2203_s7, %s1732_s27  ;;  %s91_s2 = int_to_ptr.vmem [resolvable:$true] %s90_s2 }
  0x58   :  { %p1736_p13 = scmp.lt.u32.totalorder %s1732_s27, %s2203_s7 }
  0x5a   :  { %p1738_p0 = pnand %p1736_p13, %p1733_p12 }
  0x5c   :  { %1741 = shalt.err (!%p1738_p0)
}
  0x5d   :  { %s1742_s30 = scalar_lea.vmem %s91_s2, 4096  ;;  %p1747_p2 = scmp.lt.s32.totalorder %s91_s2, %s91_s2 }
  0x5e   :  { %p1743_p1 = scmp.ne.s32.totalorder %s91_s2, %s1742_s30  ;;  %p1748_p3 = scmp.lt.s32.totalorder %s1742_s30, %s1742_s30 }
  0x60   :  { %p1749_p4 = por %p1748_p3, %p1747_p2 }
  0x62   :  { %p1750_p5 = pnand %p1749_p4, %p1743_p1 }
  0x64   :  { %1753 = shalt.err (!%p1750_p5)
}
  0x65   :  { %96 = dma.hbm_to_vmem [thread:$0]  %s2203_s7, 4096, %s91_s2, [#allocation12], %s1791_s18, %s1791_s18, %s1792_s24  }
  0x66   :  { %1776 = dma.done.wait [#allocation3], 256  }
  0x67   :  { %1777 = vsyncadd [#allocation3], 4294967040 }
  0x68   :  { %1778 = dma.done.wait [#allocation6], 1024  }
  0x69   :  { %1779 = vsyncadd [#allocation6], 4294966272 }
  0x6a   :  { %1780 = dma.done.wait [#allocation9], 3072  }
  0x6b   :  { %1781 = vsyncadd [#allocation9], 4294964224 }
  0x6c   :  { %1782 = dma.done.wait [#allocation12], 4096  }
  0x6d   :  { %1783 = vsyncadd [#allocation12], 4294963200  ;;  %v1796_v0 = vmov 0.0|0.0   ;;  %vm1797_vm0 = vmmov 0   ;;  %v1798_v1 = vmov 0.0   ;;  %v202_v2 = vld [vmem:[#allocation8] sm:$0xff]  ;;  %v299_v46 = vlaneseq }
  0x6e   :  { %1426 = vmatprep.subr.bf16.mxu0 %v1796_v0  ;;  %1304 = vmatprep.mubr.msk.f32.mxu0 %vm1797_vm0, %v1798_v1  ;;  %v203_v3 = vld [vmem:[#allocation8 + $0x8] sm:$0xff]  ;;  %v204_v4 = vld [vmem:[#allocation8 + $0x10] sm:$0xff]  ;;  %v205_v6 = vld [vmem:[#allocation8 + $0x18] sm:$0xff]  ;;  %vm211_vm1 = vcmask 523264   ;;  %vm125_vm2 = vcmask 130048   ;;  %vm1035_vm3 = vcmask 261120  }
  0x6f   :  { %v1429_v5 = vpack.c.bf16 %v203_v3, %v202_v2  ;;  %v122_v7 = vld [vmem:[#allocation7] sm:$0xff]  ;;  %v123_v8 = vld [vmem:[#allocation7 + $0x8] sm:$0xff]  ;;  %v1433_v9 = vpack.c.bf16 %v205_v6, %v204_v4  ;;  %v206_v11 = vld [vmem:[#allocation8 + $0x20] sm:$0xff]  ;;  %v1799_v44 = vmov 1966171168   ;;  %v1957_v48 = vshrl.u32 %v299_v46, 7 }
  0x70   :  { %v1427_v10 = vpack.c.bf16 %v123_v8, %v122_v7  ;;  %v207_v12 = vld [vmem:[#allocation8 + $0x28] sm:$0xff]  ;;  %v200_v13 = vld [vmem:[#allocation2] sm:$0xff]  ;;  %v330_v15 = vld [vmem:[#allocation10] sm:$0xff]  ;;  %v297_v45 = vunpack.c.l.s4 %v1799_v44  ;;  %vm1098_vm4 = vcmask 1041409   ;;  %vm1172_vm5 = vcmask 25600  }
  0x71   :  { %1430 = vmatprep.subr.bf16.mxu1 %v1429_v5  ;;  %v121_v14 = vld [vmem:[%s2196_s0] sm:$0x3]  ;;  %v331_v16 = vld [vmem:[#allocation10 + $0x8] sm:$0xff]  ;;  %v1437_v17 = vpack.c.bf16 %v207_v12, %v206_v11  ;;  %1323 = vmatprep.mubr.msk.f32.mxu1 %vm211_vm1, %v200_v13  ;;  %v333_v21 = vld [vmem:[#allocation10 + $0x18] sm:$0xff]  ;;  %v1961_v57 = vsub.s32 0, %v1957_v48 }
  0x72   :  { %1432 = vmatpush3.bf16.msra.mxu1 %v1429_v5  ;;  %1428 = vmatpush3.bf16.msra.mxu0 %v1427_v10  ;;  %v208_v18 = vld [vmem:[#allocation8 + $0x30] sm:$0xff]  ;;  %v1445_v19 = vpack.c.bf16 %v331_v16, %v330_v15  ;;  %v209_v22 = vld [vmem:[#allocation8 + $0x38] sm:$0xff]  ;;  %v334_v24 = vld [vmem:[#allocation10 + $0x20] sm:$0xff]  ;;  %v298_v47 = vunpack.c.0.s8 %v297_v45 }
  0x73   :  { %1434 = vmatprep.subr.bf16.mxu1 %v1433_v9  ;;  %v332_v20 = vld [vmem:[#allocation10 + $0x10] sm:$0xff]  ;;  %v335_v25 = vld [vmem:[#allocation10 + $0x28] sm:$0xff]  ;;  %v1441_v26 = vpack.c.bf16 %v209_v22, %v208_v18  ;;  %v337_v29 = vld [vmem:[#allocation10 + $0x38] sm:$0xff] }
  0x74   :  { %v1449_v23 = vpack.c.bf16 %v333_v21, %v332_v20  ;;  %1446 = vmatprep.subr.bf16.mxu0 %v1445_v19  ;;  %v1453_v27 = vpack.c.bf16 %v335_v25, %v334_v24  ;;  %v336_v28 = vld [vmem:[#allocation10 + $0x30] sm:$0xff]  ;;  %v201_v31 = vld [vmem:[#allocation2 + $0x8] sm:$0xff]  ;;  %v338_v32 = vld [vmem:[#allocation10 + $0x40] sm:$0xff]  ;;  %v301_v52 = vsub.s32 %v298_v47, %v1957_v48 }
  0x75   :  { %1305 = vmatmul.mubr.msk.f32.vlgmr.msra.gmra.mrb[0].mxu0 %vm125_vm2, %v121_v14  ;;  %v1457_v30 = vpack.c.bf16 %v337_v29, %v336_v28  ;;  %v339_v33 = vld [vmem:[#allocation10 + $0x48] sm:$0xff]  ;;  %v340_v35 = vld [vmem:[#allocation10 + $0x50] sm:$0xff]  ;;  %v341_v36 = vld [vmem:[#allocation10 + $0x58] sm:$0xff] }
  0x76   :  { %1436 = vmatpush3.bf16.msra.mxu1 %v1433_v9  ;;  %1448 = vmatpush3.bf16.msra.mxu0 %v1445_v19  ;;  %v1461_v34 = vpack.c.bf16 %v339_v33, %v338_v32  ;;  %v1465_v37 = vpack.c.bf16 %v341_v36, %v340_v35  ;;  %v342_v38 = vld [vmem:[#allocation10 + $0x60] sm:$0xff]  ;;  %v343_v39 = vld [vmem:[#allocation10 + $0x68] sm:$0xff]  ;;  %v344_v41 = vld [vmem:[#allocation10 + $0x70] sm:$0xff] }
  0x77   :  { %1438 = vmatprep.subr.bf16.mxu1 %v1437_v17  ;;  %1450 = vmatprep.subr.bf16.mxu0 %v1449_v23  ;;  %v1469_v40 = vpack.c.bf16 %v343_v39, %v342_v38  ;;  %v345_v42 = vld [vmem:[#allocation10 + $0x78] sm:$0xff]  ;;  %v124_v49 = vld [vmem:[#allocation5] ss:$0 sm:$0xff]  ;;  %v210_v60 = vld [vmem:[#allocation5 + $0x1] ss:$0 sm:$0xff] }
  0x78   :  { %v1473_v43 = vpack.c.bf16 %v345_v42, %v344_v41  ;;  %v458_v9 = vld [vmem:[%s2202_s6 + $0x8] sm:$0xff]  ;;  %v460_v10 = vld [vmem:[%s2202_s6 + $0x18] sm:$0xff]  ;;  %v457_v12 = vld [vmem:[%s2202_s6] sm:$0xff] }
  0x79   :  { %v1477_v11 = vpack.c.bf16 %v460_v10, %v458_v9  ;;  %v459_v13 = vld [vmem:[%s2202_s6 + $0x10] sm:$0xff]  ;;  %v462_v15 = vld [vmem:[%s2202_s6 + $0x28] sm:$0xff]  ;;  %v464_v16 = vld [vmem:[%s2202_s6 + $0x38] sm:$0xff] }
  0x7a   :  { %1440 = vmatpush3.bf16.msra.mxu1 %v1437_v17  ;;  %1452 = vmatpush3.bf16.msra.mxu0 %v1449_v23  ;;  %v1479_v14 = vpack.c.bf16 %v459_v13, %v457_v12  ;;  %v1481_v17 = vpack.c.bf16 %v464_v16, %v462_v15  ;;  %v461_v18 = vld [vmem:[%s2202_s6 + $0x20] sm:$0xff]  ;;  %v463_v19 = vld [vmem:[%s2202_s6 + $0x30] sm:$0xff]  ;;  %v466_v21 = vld [vmem:[%s2202_s6 + $0x48] sm:$0xff] }
  0x7b   :  { %1442 = vmatprep.subr.bf16.mxu1 %v1441_v26  ;;  %1454 = vmatprep.subr.bf16.mxu0 %v1453_v27  ;;  %v1483_v20 = vpack.c.bf16 %v463_v19, %v461_v18  ;;  %v468_v22 = vld [vmem:[%s2202_s6 + $0x58] sm:$0xff]  ;;  %v465_v24 = vld [vmem:[%s2202_s6 + $0x40] sm:$0xff]  ;;  %v467_v25 = vld [vmem:[%s2202_s6 + $0x50] sm:$0xff] }
  0x7c   :  { %v1485_v23 = vpack.c.bf16 %v468_v22, %v466_v21  ;;  %v472_v28 = vld [vmem:[%s2202_s6 + $0x78] sm:$0xff]  ;;  %v474_v33 = vld [vmem:[%s2202_s6 + $0x88] sm:$0xff]  ;;  %v473_v36 = vld [vmem:[%s2202_s6 + $0x80] sm:$0xff] }
  0x7d   :  { %v478_v39 = vld [vmem:[%s2202_s6 + $0xa8] sm:$0xff]  ;;  %v477_v42 = vld [vmem:[%s2202_s6 + $0xa0] sm:$0xff]  ;;  %v484_v46 = vld [vmem:[%s2202_s6 + $0xd8] sm:$0xff] }
  0x7e   :  { %1444 = vmatpush3.bf16.msra.mxu1 %v1441_v26  ;;  %1456 = vmatpush3.bf16.msra.mxu0 %v1453_v27  ;;  %v1487_v26 = vpack.c.bf16 %v467_v25, %v465_v24  ;;  %v470_v27 = vld [vmem:[%s2202_s6 + $0x68] sm:$0xff] }
  0x7f   :  { %1458 = vmatprep.subr.bf16.mxu0 %v1457_v30  ;;  %1478 = vmatprep.subr.bf16.mxu1 %v1477_v11  ;;  %v1489_v29 = vpack.c.bf16 %v472_v28, %v470_v27  ;;  %v482_v45 = vld [vmem:[%s2202_s6 + $0xc8] sm:$0xff]  ;;  %v449_v27 = vld [vmem:[#allocation5 + $0x10] ss:$0 sm:$0xff] }
  0x80   :  { %v1501_v47 = vpack.c.bf16 %v484_v46, %v482_v45  ;;  %v673_v46 = vld [vmem:[#allocation11 + $0x10] sm:$0xff] }
  0x81   :  { %1324 = vmatmul.mubr.msk.f32.vlgmr.msra.gmra.mrb[0].mxu1 %vm211_vm1, %v201_v31  ;;  %v471_v31 = vld [vmem:[%s2202_s6 + $0x70] sm:$0xff] }
  0x82   :  { %1460 = vmatpush3.bf16.msra.mxu0 %v1457_v30  ;;  %566 = vmatprep.mubr.f32.mxu1 %v1798_v1  ;;  %v469_v30 = vld [vmem:[%s2202_s6 + $0x60] sm:$0xff] }
  0x83   :  { %1462 = vmatprep.subr.bf16.mxu0 %v1461_v34  ;;  %1480 = vmatpush1.bf16.msra.mxu1 %v1479_v14  ;;  %v1491_v32 = vpack.c.bf16 %v471_v31, %v469_v30  ;;  %v452_v30 = vld [vmem:[#allocation5 + $0x15] ss:$0 sm:$0xff] }
  0x84   :  { %1482 = vmatprep.subr.bf16.mxu1 %v1481_v17 }
  0x86   :  { %1464 = vmatpush3.bf16.msra.mxu0 %v1461_v34  ;;  %v476_v34 = vld [vmem:[%s2202_s6 + $0x98] sm:$0xff] }
  0x87   :  { %1466 = vmatprep.subr.bf16.mxu0 %v1465_v37  ;;  %1484 = vmatpush1.bf16.msra.mxu1 %v1483_v20  ;;  %v1493_v35 = vpack.c.bf16 %v476_v34, %v474_v33 }
  0x88   :  { %1486 = vmatprep.subr.bf16.mxu1 %v1485_v23 }
  0x8a   :  { %1468 = vmatpush3.bf16.msra.mxu0 %v1465_v37  ;;  %v475_v37 = vld [vmem:[%s2202_s6 + $0x90] sm:$0xff] }
  0x8b   :  { %1470 = vmatprep.subr.bf16.mxu0 %v1469_v40  ;;  %1488 = vmatpush1.bf16.msra.mxu1 %v1487_v26  ;;  %v1495_v38 = vpack.c.bf16 %v475_v37, %v473_v36  ;;  %v687_v37 = vld [vmem:[#allocation11 + $0x80] sm:$0xff] }
  0x8c   :  { %1490 = vmatprep.subr.bf16.mxu1 %v1489_v29 }
  0x8e   :  { %1472 = vmatpush3.bf16.msra.mxu0 %v1469_v40  ;;  %v480_v40 = vld [vmem:[%s2202_s6 + $0xb8] sm:$0xff] }
  0x8f   :  { %1474 = vmatprep.subr.bf16.mxu0 %v1473_v43  ;;  %1492 = vmatpush1.bf16.msra.mxu1 %v1491_v32  ;;  %v1497_v41 = vpack.c.bf16 %v480_v40, %v478_v39  ;;  %v671_v40 = vld [vmem:[#allocation11] sm:$0xff] }
  0x90   :  { %1494 = vmatprep.subr.bf16.mxu1 %v1493_v35 }
  0x92   :  { %1476 = vmatpush3.bf16.msra.mxu0 %v1473_v43  ;;  %v479_v43 = vld [vmem:[%s2202_s6 + $0xb0] sm:$0xff] }
  0x93   :  { %1496 = vmatpush1.bf16.msra.mxu1 %v1495_v38  ;;  %v1499_v44 = vpack.c.bf16 %v479_v43, %v477_v42  ;;  %v688_v38 = vld [vmem:[#allocation11 + $0x88] sm:$0xff]  ;;  %v689_v43 = vld [vmem:[#allocation11 + $0x90] sm:$0xff] }
  0x94   :  { %1498 = vmatprep.subr.bf16.mxu1 %v1497_v41  ;;  %v1509_v39 = vpack.c.bf16 %v688_v38, %v687_v37  ;;  %v672_v41 = vld [vmem:[#allocation11 + $0x8] sm:$0xff] }
  0x95   :  { %v1511_v42 = vpack.c.bf16 %v672_v41, %v671_v40 }
  0x96   :  { %1510 = vmatprep.subr.bf16.mxu0 %v1509_v39 }
  0x97   :  { %1500 = vmatpush1.bf16.msra.mxu1 %v1499_v44  ;;  %v690_v44 = vld [vmem:[#allocation11 + $0x98] sm:$0xff] }
  0x98   :  { %1502 = vmatprep.subr.bf16.mxu1 %v1501_v47  ;;  %v1513_v45 = vpack.c.bf16 %v690_v44, %v689_v43  ;;  %v674_v47 = vld [vmem:[#allocation11 + $0x18] sm:$0xff] }
 0x148   :  { %v195_v50 = vpop.f32.mrb[0].mxu0 }
 0x149   :  { %v196_v51 = vadd.f32 %v195_v50, %v124_v49  ;;  %v1306_v53 = vpop.f32.mrb[1].mxu0  ;;  %v481_v49 = vld [vmem:[%s2202_s6 + $0xc0] sm:$0xff]  ;;  %v483_v50 = vld [vmem:[%s2202_s6 + $0xd0] sm:$0xff] }
 0x14a   :  { %v488_v53 = vld [vmem:[%s2202_s6 + $0xf8] sm:$0xff] }
 0x14b   :  { %v199_v54 = vmax.f32 %v196_v51, 0.0  ;;  %v1503_v51 = vpack.c.bf16 %v483_v50, %v481_v49  ;;  %v1515_v49 = vpack.c.bf16 %v674_v47, %v673_v46  ;;  %v691_v50 = vld [vmem:[#allocation11 + $0xa0] sm:$0xff] }
 0x14d   :  { %v302_v55 = vrot.slane %v199_v54, %v301_v52  ;;  %1504 = vmatpush1.bf16.msra.mxu1 %v1503_v51  ;;  %v692_v51 = vld [vmem:[#allocation11 + $0xa8] sm:$0xff] }
 0x14f   :  { %v303_v56 = vcombine.high %v302_v55, %v302_v55  ;;  %v310_v59 = vrot.slane %v302_v55, %v301_v52  ;;  %v485_v55 = vld [vmem:[%s2202_s6 + $0xe0] sm:$0xff] }
 0x151   :  { %v317_v58 = vrot.slane %v303_v56, %v301_v52  ;;  %v321_v4 = vrot.slane %v310_v59, %v1961_v57  ;;  %v486_v52 = vld [vmem:[%s2202_s6 + $0xe8] sm:$0xff]  ;;  %v487_v56 = vld [vmem:[%s2202_s6 + $0xf0] sm:$0xff] }
 0x152   :  { %v1505_v54 = vpack.c.bf16 %v488_v53, %v486_v52  ;;  %v346_v59 = vld [vmem:[#allocation5 + $0x2] ss:$0 sm:$0xff]  ;;  %v1517_v52 = vpack.c.bf16 %v692_v51, %v691_v50 }
 0x153   :  { %v325_v63 = vrot.slane %v317_v58, %v1961_v57  ;;  %v1507_v58 = vpack.c.bf16 %v487_v56, %v485_v55  ;;  %v675_v53 = vld [vmem:[#allocation11 + $0x20] sm:$0xff]  ;;  %v693_v56 = vld [vmem:[#allocation11 + $0xb0] sm:$0xff] }
 0x154   :  { %v1325_v61 = vpop.f32.mrb[0].mxu1  ;;  %1506 = vmatprep.subr.bf16.mxu1 %v1505_v54  ;;  %v676_v54 = vld [vmem:[#allocation11 + $0x28] sm:$0xff] }
 0x155   :  { %v290_v62 = vadd.f32 %v1325_v61, %v210_v60  ;;  %v284_v2 = vpop.f32.mrb[1].mxu1  ;;  %1508 = vmatpush1.bf16.msra.mxu1 %v1507_v58  ;;  %v1519_v55 = vpack.c.bf16 %v676_v54, %v675_v53  ;;  %v694_v58 = vld [vmem:[#allocation11 + $0xb8] sm:$0xff] }
 0x156   :  { %v285_v3 = vadd.f32 %v284_v2, %v210_v60 }
 0x157   :  { %v294_v5 = vmax.f32 %v290_v62, 0.0 }
 0x158   :  { %v293_v6 = vmax.f32 %v285_v3, 0.0 }
 0x159   :  { %v329_v7 = vmul.f32 %v325_v63, %v294_v5 }
 0x15a   :  { %v328_v8 = vmul.f32 %v321_v4, %v293_v6 }
 0x15c   :  { %1358 = vmatprep.mubr.f32.mxu0 %v328_v8 }
 0x15d   :  { %1359 = vmatmul.mubr.f32.vlgmr.msra.gmra.mrb[2].mxu0 %v329_v7 }
 0x15e   :  { %1512 = vmatpush3.bf16.msra.mxu0 %v1511_v42 }
 0x15f   :  { %1514 = vmatprep.subr.bf16.mxu0 %v1513_v45 }
 0x162   :  { %1516 = vmatpush3.bf16.msra.mxu0 %v1515_v49 }
 0x163   :  { %1518 = vmatprep.subr.bf16.mxu0 %v1517_v52 }
 0x166   :  { %1520 = vmatpush3.bf16.msra.mxu0 %v1519_v55 }
 0x230   :  { %v1360_v60 = vpop.f32.mrb[2].mxu0 }
 0x231   :  { %v419_v61 = vadd.f32 %v1360_v60, %v346_v59  ;;  %v413_v62 = vpop.f32.mrb[3].mxu0  ;;  %v677_v60 = vld [vmem:[#allocation11 + $0x30] sm:$0xff] }
 0x232   :  { %v414_v63 = vadd.f32 %v413_v62, %v346_v59  ;;  %v1521_v59 = vpack.c.bf16 %v694_v58, %v693_v56 }
 0x233   :  { %v430_v2 = vmul.f32 %v419_v61, %v419_v61 }
 0x234   :  { %v422_v3 = vadd.f32 %v419_v61, %v414_v63  ;;  %v429_v4 = vmul.f32 %v414_v63, %v414_v63  ;;  %1522 = vmatprep.subr.bf16.mxu0 %v1521_v59 }
 0x236   :  { %v423_v5 = vrot.slane %v422_v3, 4  ;;  %v431_v6 = vadd.f32 %v430_v2, %v429_v4  ;;  %v696_v2 = vld [vmem:[#allocation11 + $0xc8] sm:$0xff]  ;;  %v679_v4 = vld [vmem:[#allocation11 + $0x40] sm:$0xff] }
 0x238   :  { %v424_v7 = vadd.f32 %v423_v5, %v422_v3  ;;  %v432_v8 = vrot.slane %v431_v6, 4  ;;  %v680_v5 = vld [vmem:[#allocation11 + $0x48] sm:$0xff] }
 0x23a   :  { %v425_v9 = vrot.slane %v424_v7, 2  ;;  %v433_v10 = vadd.f32 %v432_v8, %v431_v6  ;;  %v1527_v6 = vpack.c.bf16 %v680_v5, %v679_v4  ;;  %v698_v8 = vld [vmem:[#allocation11 + $0xd8] sm:$0xff] }
 0x23c   :  { %v426_v11 = vadd.f32 %v425_v9, %v424_v7  ;;  %v434_v12 = vrot.slane %v433_v10, 2  ;;  %v697_v7 = vld [vmem:[#allocation11 + $0xd0] sm:$0xff] }
 0x23d   :  { %v1529_v9 = vpack.c.bf16 %v698_v8, %v697_v7 }
 0x23e   :  { %v427_v13 = vrot.slane %v426_v11, 1  ;;  %v435_v14 = vadd.f32 %v434_v12, %v433_v10  ;;  %v681_v10 = vld [vmem:[#allocation11 + $0x50] sm:$0xff] }
 0x240   :  { %v428_v15 = vadd.f32 %v427_v13, %v426_v11  ;;  %v436_v16 = vrot.slane %v435_v14, 1  ;;  %v682_v11 = vld [vmem:[#allocation11 + $0x58] sm:$0xff]  ;;  %v699_v13 = vld [vmem:[#allocation11 + $0xe0] sm:$0xff] }
 0x241   :  { %v1531_v12 = vpack.c.bf16 %v682_v11, %v681_v10 }
 0x242   :  { %v437_v17 = vadd.f32 %v436_v16, %v435_v14  ;;  %v438_v18 = vmul.f32 0.0625, %v428_v15  ;;  %v700_v14 = vld [vmem:[#allocation11 + $0xe8] sm:$0xff]  ;;  %v683_v16 = vld [vmem:[#allocation11 + $0x60] sm:$0xff] }
 0x243   :  { %v1533_v15 = vpack.c.bf16 %v700_v14, %v699_v13 }
 0x244   :  { %v439_v19 = vmul.f32 0.0625, %v437_v17  ;;  %v440_v20 = vmul.f32 %v438_v18, %v438_v18  ;;  %v443_v21 = vsub.f32 %v414_v63, %v438_v18  ;;  %v444_v22 = vsub.f32 %v419_v61, %v438_v18  ;;  %v678_v61 = vld [vmem:[#allocation11 + $0x38] sm:$0xff]  ;;  %v695_v63 = vld [vmem:[#allocation11 + $0xc0] sm:$0xff]  ;;  %v684_v17 = vld [vmem:[#allocation11 + $0x68] sm:$0xff] }
 0x245   :  { %v1523_v62 = vpack.c.bf16 %v678_v61, %v677_v60  ;;  %v1525_v3 = vpack.c.bf16 %v696_v2, %v695_v63  ;;  %v1535_v18 = vpack.c.bf16 %v684_v17, %v683_v16 }
 0x246   :  { %v441_v23 = vsub.f32 %v439_v19, %v440_v20  ;;  %v701_v19 = vld [vmem:[#allocation11 + $0xf0] sm:$0xff]  ;;  %v702_v20 = vld [vmem:[#allocation11 + $0xf8] sm:$0xff] }
 0x247   :  { %1524 = vmatpush3.bf16.msra.mxu0 %v1523_v62 }
 0x248   :  { %v442_v24 = vmax.f32 %v441_v23, 0.0  ;;  %1526 = vmatprep.subr.bf16.mxu0 %v1525_v3  ;;  %v686_v23 = vld [vmem:[#allocation11 + $0x78] sm:$0xff] }
 0x24a   :  { %v445_v25 = vadd.f32 1e-05, %v442_v24 }
 0x24b   :  { %1528 = vmatpush3.bf16.msra.mxu0 %v1527_v6 }
 0x24c   :  { %1610 = vrsqrt.f32 %v445_v25  ;;  %1530 = vmatprep.subr.bf16.mxu0 %v1529_v9  ;;  %v490_v25 = vld [vmem:[#allocation5 + $0x3] ss:$8 sm:$0x3] }
 0x24f   :  { %1532 = vmatpush3.bf16.msra.mxu0 %v1531_v12 }
 0x250   :  { %1534 = vmatprep.subr.bf16.mxu0 %v1533_v15 }
 0x253   :  { %1536 = vmatpush3.bf16.msra.mxu0 %v1535_v18 }
 0x256   :  { %v1611_v26 = vpop.eup %1610 }
 0x257   :  { %v447_v28 = vmul.f32 %v1611_v26, %v443_v21  ;;  %v448_v29 = vmul.f32 %v1611_v26, %v444_v22  ;;  %v685_v21 = vld [vmem:[#allocation11 + $0x70] sm:$0xff]  ;;  %v1537_v22 = vpack.c.bf16 %v702_v20, %v701_v19  ;;  %v2063_v26 = vsub.s32 1, %v1957_v48 }
 0x258   :  { %v1539_v24 = vpack.c.bf16 %v686_v23, %v685_v21 }
 0x259   :  { %v450_v31 = vmul.f32 %v449_v27, %v447_v28  ;;  %v451_v32 = vmul.f32 %v449_v27, %v448_v29  ;;  %1538 = vmatprep.subr.bf16.mxu0 %v1537_v22  ;;  %v495_v27 = vrot.slane %v490_v25, %v1961_v57  ;;  %v499_v29 = vrot.slane %v490_v25, %v2063_v26  ;;  %v651_v25 = vld [vmem:[#allocation5 + $0x16] ss:$8 sm:$0x3] }
 0x25a   :  { %1540 = vmatpush3.bf16.msra.mxu0 %v1539_v24  ;;  %v634_v24 = vld [vmem:[#allocation5 + $0x11] ss:$8 sm:$0x3] }
 0x25b   :  { %v453_v33 = vadd.f32 %v452_v30, %v450_v31  ;;  %v454_v35 = vadd.f32 %v452_v30, %v451_v32 }
 0x25d   :  { %v455_v34 = vmax.f32 %v453_v33, 0.0  ;;  %v456_v36 = vmax.f32 %v454_v35, 0.0 }
 0x25f   :  { %567 = vmatmul.mubr.f32.vlgmr.msra.gmra.mrb[2].mxu1 %v455_v34 }
 0x260   :  { %572 = vmatprep.mubr.f32.mxu1 %v1798_v1 }
 0x263   :  { %573 = vmatmul.mubr.f32.gmra.mrb[4].mxu1 %v456_v36 }
 0x332   :  { %v568_v28 = vpop.f32.mrb[2].mxu1 }
 0x333   :  { %v570_v30 = vpop.f32.mrb[3].mxu1  ;;  %v2067_v31 = vadd.f32 %v568_v28, %v495_v27 }
 0x334   :  { %v2069_v32 = vadd.f32 %v570_v30, %v499_v29 }
 0x335   :  { %v593_v37 = vmul.f32 %v2067_v31, %v2067_v31 }
 0x336   :  { %v574_v33 = vpop.f32.mrb[4].mxu1  ;;  %v594_v39 = vmul.f32 %v2069_v32, %v2069_v32 }
 0x337   :  { %v575_v34 = vadd.f32 %v574_v33, %v495_v27  ;;  %v576_v35 = vpop.f32.mrb[5].mxu1  ;;  %v639_v27 = vrot.slane %v634_v24, %v1961_v57  ;;  %v656_v33 = vrot.slane %v651_v25, %v1961_v57 }
 0x338   :  { %v577_v36 = vadd.f32 %v576_v35, %v499_v29  ;;  %v643_v29 = vrot.slane %v634_v24, %v2063_v26 }
 0x339   :  { %v579_v48 = vadd.f32 %v575_v34, %v2067_v31  ;;  %v595_v38 = vmul.f32 %v575_v34, %v575_v34 }
 0x33a   :  { %v586_v40 = vadd.f32 %v577_v36, %v2069_v32  ;;  %v596_v41 = vmul.f32 %v577_v36, %v577_v36 }
 0x33b   :  { %v580_v42 = vrot.slane %v579_v48, 4  ;;  %v597_v43 = vadd.f32 %v595_v38, %v593_v37 }
 0x33c   :  { %v587_v44 = vrot.slane %v586_v40, 4  ;;  %v604_v45 = vadd.f32 %v596_v41, %v594_v39 }
 0x33d   :  { %v581_v46 = vadd.f32 %v580_v42, %v579_v48  ;;  %v598_v47 = vrot.slane %v597_v43, 4 }
 0x33e   :  { %v588_v49 = vadd.f32 %v587_v44, %v586_v40  ;;  %v605_v50 = vrot.slane %v604_v45, 4 }
 0x33f   :  { %v582_v51 = vrot.slane %v581_v46, 2  ;;  %v599_v52 = vadd.f32 %v598_v47, %v597_v43  ;;  %v815_v47 = vld [vmem:[%s2204_s8 + $0x8] sm:$0xff] }
 0x340   :  { %v589_v53 = vrot.slane %v588_v49, 2  ;;  %v606_v54 = vadd.f32 %v605_v50, %v604_v45  ;;  %v816_v50 = vld [vmem:[%s2204_s8 + $0x10] sm:$0xff] }
 0x341   :  { %v583_v55 = vadd.f32 %v582_v51, %v581_v46  ;;  %v600_v56 = vrot.slane %v599_v52, 2  ;;  %v817_v51 = vld [vmem:[%s2204_s8 + $0x18] sm:$0xff] }
 0x342   :  { %v590_v58 = vadd.f32 %v589_v53, %v588_v49  ;;  %v607_v59 = vrot.slane %v606_v54, 2  ;;  %v818_v53 = vld [vmem:[%s2204_s8 + $0x20] sm:$0xff] }
 0x343   :  { %v584_v60 = vrot.slane %v583_v55, 1  ;;  %v601_v61 = vadd.f32 %v600_v56, %v599_v52  ;;  %v1545_v52 = vpack.c.bf16 %v817_v51, %v816_v50  ;;  %v820_v56 = vld [vmem:[%s2204_s8 + $0x30] sm:$0xff] }
 0x344   :  { %v591_v62 = vrot.slane %v590_v58, 1  ;;  %v608_v63 = vadd.f32 %v607_v59, %v606_v54  ;;  %v819_v54 = vld [vmem:[%s2204_s8 + $0x28] sm:$0xff] }
 0x345   :  { %v585_v2 = vadd.f32 %v584_v60, %v583_v55  ;;  %v602_v3 = vrot.slane %v601_v61, 1  ;;  %v1549_v55 = vpack.c.bf16 %v819_v54, %v818_v53  ;;  %v822_v60 = vld [vmem:[%s2204_s8 + $0x40] sm:$0xff]  ;;  %v946_v54 = vld [vmem:[%s2205_s9 + $0x8] sm:$0xff] }
 0x346   :  { %v592_v4 = vadd.f32 %v591_v62, %v590_v58  ;;  %v609_v5 = vrot.slane %v608_v63, 1  ;;  %v821_v58 = vld [vmem:[%s2204_s8 + $0x38] sm:$0xff]  ;;  %v945_v53 = vld [vmem:[%s2205_s9] sm:$0xff] }
 0x347   :  { %v603_v6 = vadd.f32 %v602_v3, %v601_v61  ;;  %v611_v7 = vmul.f32 0.0625, %v585_v2  ;;  %v1553_v59 = vpack.c.bf16 %v821_v58, %v820_v56  ;;  %v823_v61 = vld [vmem:[%s2204_s8 + $0x48] sm:$0xff]  ;;  %v825_v2 = vld [vmem:[%s2204_s8 + $0x58] sm:$0xff]  ;;  %v947_v56 = vld [vmem:[%s2205_s9 + $0x10] sm:$0xff] }
 0x348   :  { %v610_v8 = vadd.f32 %v609_v5, %v608_v63  ;;  %v612_v9 = vmul.f32 0.0625, %v592_v4  ;;  %v1557_v62 = vpack.c.bf16 %v823_v61, %v822_v60  ;;  %v824_v63 = vld [vmem:[%s2204_s8 + $0x50] sm:$0xff]  ;;  %v826_v4 = vld [vmem:[%s2204_s8 + $0x60] sm:$0xff]  ;;  %v827_v5 = vld [vmem:[%s2204_s8 + $0x68] sm:$0xff] }
 0x349   :  { %v613_v10 = vmul.f32 0.0625, %v603_v6  ;;  %v615_v11 = vmul.f32 %v611_v7, %v611_v7  ;;  %v623_v12 = vsub.f32 %v575_v34, %v611_v7  ;;  %v621_v13 = vsub.f32 %v2067_v31, %v611_v7  ;;  %v828_v7 = vld [vmem:[%s2204_s8 + $0x70] sm:$0xff]  ;;  %v948_v58 = vld [vmem:[%s2205_s9 + $0x18] sm:$0xff]  ;;  %v950_v60 = vld [vmem:[%s2205_s9 + $0x28] sm:$0xff] }
 0x34a   :  { %v614_v14 = vmul.f32 0.0625, %v610_v8  ;;  %v616_v15 = vmul.f32 %v612_v9, %v612_v9  ;;  %v624_v16 = vsub.f32 %v577_v36, %v612_v9  ;;  %v622_v17 = vsub.f32 %v2069_v32, %v612_v9  ;;  %v829_v8 = vld [vmem:[%s2204_s8 + $0x78] sm:$0xff] }
 0x34b   :  { %v617_v18 = vsub.f32 %v613_v10, %v615_v11  ;;  %v660_v36 = vrot.slane %v651_v25, %v2063_v26  ;;  %v814_v26 = vld [vmem:[%s2204_s8] sm:$0xff]  ;;  %v1561_v3 = vpack.c.bf16 %v825_v2, %v824_v63  ;;  %v1565_v6 = vpack.c.bf16 %v827_v5, %v826_v4  ;;  %v952_v63 = vld [vmem:[%s2205_s9 + $0x38] sm:$0xff] }
 0x34c   :  { %v618_v19 = vsub.f32 %v614_v14, %v616_v15  ;;  %v1541_v49 = vpack.c.bf16 %v815_v47, %v814_v26  ;;  %v1569_v9 = vpack.c.bf16 %v829_v8, %v828_v7 }
 0x34d   :  { %v619_v20 = vmax.f32 %v617_v18, 0.0 }
 0x34e   :  { %v620_v21 = vmax.f32 %v618_v19, 0.0  ;;  %1542 = vmatprep.subr.bf16.mxu1 %v1541_v49 }
 0x34f   :  { %v625_v22 = vadd.f32 1e-05, %v619_v20  ;;  %1544 = vmatpush3.bf16.msra.mxu1 %v1541_v49 }
 0x350   :  { %v626_v23 = vadd.f32 1e-05, %v620_v21  ;;  %1546 = vmatprep.subr.bf16.mxu1 %v1545_v52 }
 0x351   :  { %1612 = vrsqrt.f32 %v625_v22 }
 0x352   :  { %1614 = vrsqrt.f32 %v626_v23 }
 0x353   :  { %1548 = vmatpush3.bf16.msra.mxu1 %v1545_v52 }
 0x354   :  { %1550 = vmatprep.subr.bf16.mxu1 %v1549_v55 }
 0x357   :  { %1552 = vmatpush3.bf16.msra.mxu1 %v1549_v55  ;;  %v1573_v55 = vpack.c.bf16 %v946_v54, %v945_v53 }
 0x358   :  { %1554 = vmatprep.subr.bf16.mxu1 %v1553_v59 }
 0x359   :  { %1574 = vmatprep.subr.bf16.mxu0 %v1573_v55 }
 0x35b   :  { %v1613_v28 = vpop.eup %1612  ;;  %1556 = vmatpush3.bf16.msra.mxu1 %v1553_v59  ;;  %v949_v59 = vld [vmem:[%s2205_s9 + $0x20] sm:$0xff] }
 0x35c   :  { %v1615_v30 = vpop.eup %1614  ;;  %v631_v31 = vmul.f32 %v1613_v28, %v623_v12  ;;  %v629_v32 = vmul.f32 %v1613_v28, %v621_v13  ;;  %1558 = vmatprep.subr.bf16.mxu1 %v1557_v62  ;;  %v703_v13 = vld [vmem:[#allocation5 + $0x4] ss:$0 sm:$0xff]  ;;  %v1581_v61 = vpack.c.bf16 %v950_v60, %v949_v59 }
 0x35d   :  { %v632_v34 = vmul.f32 %v1615_v30, %v624_v16  ;;  %v630_v35 = vmul.f32 %v1615_v30, %v622_v17 }
 0x35e   :  { %v646_v37 = vmul.f32 %v639_v27, %v629_v32  ;;  %v648_v40 = vmul.f32 %v639_v27, %v631_v31 }
 0x35f   :  { %v647_v48 = vmul.f32 %v643_v29, %v630_v35  ;;  %v649_v38 = vmul.f32 %v643_v29, %v632_v34  ;;  %1560 = vmatpush3.bf16.msra.mxu1 %v1557_v62  ;;  %v951_v62 = vld [vmem:[%s2205_s9 + $0x30] sm:$0xff] }
 0x360   :  { %v663_v39 = vadd.f32 %v656_v33, %v646_v37  ;;  %v665_v45 = vadd.f32 %v656_v33, %v648_v40  ;;  %1562 = vmatprep.subr.bf16.mxu1 %v1561_v3  ;;  %v1585_v2 = vpack.c.bf16 %v952_v63, %v951_v62 }
 0x361   :  { %v664_v41 = vadd.f32 %v660_v36, %v647_v48  ;;  %v666_v42 = vadd.f32 %v660_v36, %v649_v38 }
 0x362   :  { %v667_v44 = vmax.f32 %v663_v39, 0.0  ;;  %v669_v57 = vmax.f32 %v665_v45, 0.0 }
 0x363   :  { %v668_v43 = vmax.f32 %v664_v41, 0.0  ;;  %v670_v46 = vmax.f32 %v666_v42, 0.0  ;;  %1564 = vmatpush3.bf16.msra.mxu1 %v1561_v3  ;;  %v830_v3 = vld [vmem:[#allocation5 + $0x5] ss:$0 sm:$0xff] }
 0x364   :  { %1566 = vmatprep.subr.bf16.mxu1 %v1565_v6 }
 0x365   :  { %768 = vmatprep.mubr.f32.mxu0 %v668_v43 }
 0x366   :  { %769 = vmatmul.mubr.f32.vlgmr.msra.gmra.mrb[4].mxu0 %v667_v44  ;;  %v806_v44 = vld [vmem:[#allocation5 + $0x12] ss:$0 sm:$0xff] }
 0x367   :  { %773 = vmatprep.mubr.f32.mxu0 %v670_v46  ;;  %1568 = vmatpush3.bf16.msra.mxu1 %v1565_v6 }
 0x368   :  { %1570 = vmatprep.subr.bf16.mxu1 %v1569_v9  ;;  %1576 = vmatpush3.bf16.msra.mxu0 %v1573_v55 }
 0x36a   :  { %774 = vmatmul.mubr.f32.gmra.mrb[6].mxu0 %v669_v57  ;;  %v809_v57 = vld [vmem:[#allocation5 + $0x17] ss:$0 sm:$0xff] }
 0x36b   :  { %1572 = vmatpush3.bf16.msra.mxu1 %v1569_v9 }
 0x36c   :  { %1589 = vmatprep.subr.bf16.mxu1 %v1796_v0 }
 0x439   :  { %v1261_v10 = vpop.f32.mrb[4].mxu0 }
 0x43a   :  { %v1262_v11 = vpop.f32.mrb[5].mxu0 }
 0x43b   :  { %v1263_v12 = vadd.f32 %v1262_v11, %v1261_v10 }
 0x43d   :  { %v1264_v14 = vpop.f32.mrb[6].mxu0  ;;  %v771_v16 = vadd.f32 %v1263_v12, %v703_v13 }
 0x43e   :  { %v1265_v15 = vpop.f32.mrb[7].mxu0 }
 0x43f   :  { %v1266_v17 = vadd.f32 %v1265_v15, %v1264_v14  ;;  %v786_v19 = vmul.f32 %v771_v16, %v771_v16 }
 0x441   :  { %v776_v18 = vadd.f32 %v1266_v17, %v703_v13 }
 0x443   :  { %v779_v20 = vadd.f32 %v776_v18, %v771_v16  ;;  %v787_v21 = vmul.f32 %v776_v18, %v776_v18 }
 0x445   :  { %v780_v22 = vrot.slane %v779_v20, 4  ;;  %v788_v23 = vadd.f32 %v787_v21, %v786_v19 }
 0x447   :  { %v781_v24 = vadd.f32 %v780_v22, %v779_v20  ;;  %v789_v25 = vrot.slane %v788_v23, 4 }
 0x449   :  { %v782_v27 = vrot.slane %v781_v24, 2  ;;  %v790_v28 = vadd.f32 %v789_v25, %v788_v23 }
 0x44b   :  { %v783_v29 = vadd.f32 %v782_v27, %v781_v24  ;;  %v791_v30 = vrot.slane %v790_v28, 2 }
 0x44d   :  { %v784_v31 = vrot.slane %v783_v29, 1  ;;  %v792_v33 = vadd.f32 %v791_v30, %v790_v28 }
 0x44f   :  { %v785_v32 = vadd.f32 %v784_v31, %v783_v29  ;;  %v793_v34 = vrot.slane %v792_v33, 1 }
 0x451   :  { %v794_v35 = vadd.f32 %v793_v34, %v792_v33  ;;  %v795_v36 = vmul.f32 0.0625, %v785_v32 }
 0x453   :  { %v796_v37 = vmul.f32 0.0625, %v794_v35  ;;  %v797_v48 = vmul.f32 %v795_v36, %v795_v36  ;;  %v801_v38 = vsub.f32 %v776_v18, %v795_v36  ;;  %v800_v39 = vsub.f32 %v771_v16, %v795_v36 }
 0x455   :  { %v798_v40 = vsub.f32 %v796_v37, %v797_v48  ;;  %v937_v48 = vld [vmem:[#allocation5 + $0x13] ss:$0 sm:$0xff] }
 0x457   :  { %v799_v41 = vmax.f32 %v798_v40, 0.0  ;;  %v940_v40 = vld [vmem:[#allocation5 + $0x20] ss:$0 sm:$0xff] }
 0x459   :  { %v802_v42 = vadd.f32 1e-05, %v799_v41 }
 0x45b   :  { %1616 = vrsqrt.f32 %v802_v42 }
 0x465   :  { %v1617_v43 = vpop.eup %1616 }
 0x466   :  { %v805_v45 = vmul.f32 %v1617_v43, %v801_v38  ;;  %v804_v46 = vmul.f32 %v1617_v43, %v800_v39 }
 0x468   :  { %v807_v26 = vmul.f32 %v806_v44, %v804_v46  ;;  %v808_v47 = vmul.f32 %v806_v44, %v805_v45 }
 0x46a   :  { %v810_v49 = vadd.f32 %v809_v57, %v807_v26  ;;  %v811_v50 = vadd.f32 %v809_v57, %v808_v47  ;;  %v1091_v57 = vld [vmem:[%s2206_s10] sm:$0xff]  ;;  %v1092_v26 = vld [vmem:[%s2206_s10 + $0x8] sm:$0xff]  ;;  %v1093_v47 = vld [vmem:[%s2206_s10 + $0x10] sm:$0xff] }
 0x46c   :  { %v812_v51 = vmax.f32 %v810_v49, 0.0  ;;  %v813_v52 = vmax.f32 %v811_v50, 0.0  ;;  %v1590_v49 = vpack.c.bf16 %v1092_v26, %v1091_v57  ;;  %v1094_v50 = vld [vmem:[%s2206_s10 + $0x18] sm:$0xff]  ;;  %s1800_s10 = smov [#allocation13]  }
 0x46d   :  { %s1180_s6 = sshll.u32 %s1800_s10, 4  ;;  %s1181_s6 = int_to_ptr.vmem [resolvable:$true] %s1180_s6 }
 0x46e   :  { %1393 = vmatprep.mubr.f32.mxu1 %v812_v51  ;;  %v1593_v51 = vpack.c.bf16 %v1094_v50, %v1093_v47  ;;  %s1754_s23 = scalar_lea.vmem %s1181_s6, 32  ;;  %p1759_p7 = scmp.lt.s32.totalorder %s1181_s6, %s1181_s6 }
 0x46f   :  { %1394 = vmatmul.mubr.f32.vlgmr.msra.gmra.mrb[6].mxu1 %v813_v52  ;;  %v953_v52 = vld [vmem:[#allocation5 + $0x6] ss:$0 sm:$0xff]  ;;  %p1755_p6 = scmp.ne.s32.totalorder %s1181_s6, %s1754_s23  ;;  %p1760_p8 = scmp.lt.s32.totalorder %s1754_s23, %s1754_s23 }
 0x470   :  { %1423 = vmatprep.mubr.msk.f32.mxu1 %vm1797_vm0, %v1798_v1  ;;  %v1577_v1 = vpack.c.bf16 %v948_v58, %v947_v56  ;;  %1591 = vmatpush3.bf16.msra.mxu1 %v1590_v49  ;;  %v1095_v49 = vld [vmem:[#allocation5 + $0x7] ss:$0 sm:$0xff] }
 0x471   :  { %1592 = vmatprep.subr.bf16.mxu1 %v1796_v0  ;;  %p1761_p9 = por %p1760_p8, %p1759_p7 }
 0x472   :  { %1578 = vmatprep.subr.bf16.mxu0 %v1577_v1 }
 0x473   :  { %1580 = vmatpush3.bf16.msra.mxu0 %v1577_v1  ;;  %p1762_p10 = pnand %p1761_p9, %p1755_p6 }
 0x474   :  { %1582 = vmatprep.subr.bf16.mxu0 %v1581_v61  ;;  %1594 = vmatpush3.bf16.msra.mxu1 %v1593_v51 }
 0x477   :  { %1584 = vmatpush3.bf16.msra.mxu0 %v1581_v61 }
 0x478   :  { %1586 = vmatprep.subr.bf16.mxu0 %v1585_v2 }
 0x47b   :  { %1588 = vmatpush3.bf16.msra.mxu0 %v1585_v2 }
 0x542   :  { %v1395_v4 = vpop.f32.mrb[6].mxu1 }
 0x543   :  { %v903_v5 = vadd.f32 %v1395_v4, %v830_v3  ;;  %v897_v6 = vpop.f32.mrb[7].mxu1 }
 0x544   :  { %v898_v7 = vadd.f32 %v897_v6, %v830_v3 }
 0x545   :  { %v907_v8 = vsel %vm211_vm1, %v903_v5, 0.0  ;;  %v916_v9 = vmul.f32 %v903_v5, %v903_v5 }
 0x546   :  { %v906_v10 = vsel %vm211_vm1, %v898_v7, 0.0  ;;  %v915_v11 = vmul.f32 %v898_v7, %v898_v7 }
 0x547   :  { %v918_v12 = vsel %vm211_vm1, %v916_v9, 0.0  ;;  %v908_v13 = vadd.f32 %v907_v8, %v906_v10 }
 0x548   :  { %v917_v14 = vsel %vm211_vm1, %v915_v11, 0.0 }
 0x549   :  { %v909_v15 = vrot.slane %v908_v13, 4  ;;  %v919_v16 = vadd.f32 %v918_v12, %v917_v14 }
 0x54b   :  { %v910_v17 = vadd.f32 %v909_v15, %v908_v13  ;;  %v920_v18 = vrot.slane %v919_v16, 4 }
 0x54d   :  { %v911_v19 = vrot.slane %v910_v17, 2  ;;  %v921_v20 = vadd.f32 %v920_v18, %v919_v16 }
 0x54f   :  { %v912_v21 = vadd.f32 %v911_v19, %v910_v17  ;;  %v922_v22 = vrot.slane %v921_v20, 2 }
 0x551   :  { %v913_v23 = vrot.slane %v912_v21, 1  ;;  %v923_v24 = vadd.f32 %v922_v22, %v921_v20 }
 0x553   :  { %v914_v25 = vadd.f32 %v913_v23, %v912_v21  ;;  %v924_v27 = vrot.slane %v923_v24, 1  ;;  %v1067_v23 = vld [vmem:[#allocation5 + $0x14] ss:$0 sm:$0xff] }
 0x555   :  { %v925_v28 = vadd.f32 %v924_v27, %v923_v24  ;;  %v926_v29 = vmul.f32 0.0625, %v914_v25  ;;  %v1070_v27 = vld [vmem:[#allocation5 + $0x21] ss:$0 sm:$0xff] }
 0x557   :  { %v927_v30 = vmul.f32 0.0625, %v925_v28  ;;  %v928_v31 = vmul.f32 %v926_v29, %v926_v29  ;;  %v931_v33 = vsub.f32 %v898_v7, %v926_v29  ;;  %v932_v32 = vsub.f32 %v903_v5, %v926_v29 }
 0x559   :  { %v929_v34 = vsub.f32 %v927_v30, %v928_v31 }
 0x55b   :  { %v930_v35 = vmax.f32 %v929_v34, 0.0 }
 0x55d   :  { %v933_v36 = vadd.f32 1e-05, %v930_v35 }
 0x55f   :  { %1618 = vrsqrt.f32 %v933_v36 }
 0x569   :  { %v1619_v37 = vpop.eup %1618 }
 0x56a   :  { %v935_v38 = vmul.f32 %v1619_v37, %v931_v33  ;;  %v936_v39 = vmul.f32 %v1619_v37, %v932_v32 }
 0x56c   :  { %v938_v41 = vmul.f32 %v937_v48, %v935_v38  ;;  %v939_v42 = vmul.f32 %v937_v48, %v936_v39 }
 0x56e   :  { %v941_v43 = vadd.f32 %v940_v40, %v938_v41  ;;  %v942_v44 = vadd.f32 %v940_v40, %v939_v42 }
 0x570   :  { %v943_v45 = vmax.f32 %v941_v43, 0.0  ;;  %v944_v46 = vmax.f32 %v942_v44, 0.0 }
 0x572   :  { %1412 = vmatprep.mubr.msk.f32.mxu0 %vm211_vm1, %v943_v45 }
 0x573   :  { %1413 = vmatmul.mubr.msk.f32.vlgmr.msra.gmra.mrb[8].mxu0 %vm211_vm1, %v944_v46 }
 0x646   :  { %v1414_v53 = vpop.f32.mrb[8].mxu0 }
 0x647   :  { %v1032_v54 = vadd.f32 %v1414_v53, %v953_v52  ;;  %v1026_v55 = vpop.f32.mrb[9].mxu0 }
 0x648   :  { %v1027_v56 = vadd.f32 %v1026_v55, %v953_v52 }
 0x649   :  { %v1037_v58 = vsel %vm1035_vm3, %v1032_v54, 0.0  ;;  %v1046_v1 = vmul.f32 %v1032_v54, %v1032_v54 }
 0x64a   :  { %v1036_v59 = vsel %vm1035_vm3, %v1027_v56, 0.0  ;;  %v1045_v60 = vmul.f32 %v1027_v56, %v1027_v56 }
 0x64b   :  { %v1048_v61 = vsel %vm1035_vm3, %v1046_v1, 0.0  ;;  %v1038_v62 = vadd.f32 %v1037_v58, %v1036_v59 }
 0x64c   :  { %v1047_v63 = vsel %vm1035_vm3, %v1045_v60, 0.0 }
 0x64d   :  { %v1039_v2 = vrot.slane %v1038_v62, 4  ;;  %v1049_v0 = vadd.f32 %v1048_v61, %v1047_v63 }
 0x64f   :  { %v1040_v3 = vadd.f32 %v1039_v2, %v1038_v62  ;;  %v1050_v4 = vrot.slane %v1049_v0, 4 }
 0x651   :  { %v1041_v5 = vrot.slane %v1040_v3, 2  ;;  %v1051_v6 = vadd.f32 %v1050_v4, %v1049_v0 }
 0x653   :  { %v1042_v7 = vadd.f32 %v1041_v5, %v1040_v3  ;;  %v1052_v8 = vrot.slane %v1051_v6, 2 }
 0x655   :  { %v1043_v9 = vrot.slane %v1042_v7, 1  ;;  %v1053_v10 = vadd.f32 %v1052_v8, %v1051_v6 }
 0x657   :  { %v1044_v11 = vadd.f32 %v1043_v9, %v1042_v7  ;;  %v1054_v12 = vrot.slane %v1053_v10, 1 }
 0x659   :  { %v1055_v13 = vadd.f32 %v1054_v12, %v1053_v10  ;;  %v1056_v14 = vmul.f32 0.0625, %v1044_v11 }
 0x65b   :  { %v1057_v15 = vmul.f32 0.0625, %v1055_v13  ;;  %v1058_v16 = vmul.f32 %v1056_v14, %v1056_v14  ;;  %v1061_v17 = vsub.f32 %v1027_v56, %v1056_v14  ;;  %v1062_v18 = vsub.f32 %v1032_v54, %v1056_v14 }
 0x65d   :  { %v1059_v19 = vsub.f32 %v1057_v15, %v1058_v16 }
 0x65f   :  { %v1060_v20 = vmax.f32 %v1059_v19, 0.0 }
 0x661   :  { %v1063_v21 = vadd.f32 1e-05, %v1060_v20 }
 0x663   :  { %1620 = vrsqrt.f32 %v1063_v21 }
 0x66d   :  { %v1621_v22 = vpop.eup %1620 }
 0x66e   :  { %v1065_v24 = vmul.f32 %v1621_v22, %v1061_v17  ;;  %v1066_v25 = vmul.f32 %v1621_v22, %v1062_v18 }
 0x670   :  { %v1068_v28 = vmul.f32 %v1067_v23, %v1065_v24  ;;  %v1069_v29 = vmul.f32 %v1067_v23, %v1066_v25 }
 0x672   :  { %v1071_v30 = vadd.f32 %v1070_v27, %v1068_v28  ;;  %v1072_v31 = vadd.f32 %v1070_v27, %v1069_v29 }
 0x674   :  { %v1073_v33 = vmax.f32 %v1071_v30, 0.0  ;;  %v1074_v32 = vmax.f32 %v1072_v31, 0.0 }
 0x676   :  { %v1075_v34 = vsel %vm1035_vm3, %v1073_v33, 0.0  ;;  %v1082_v35 = vsel %vm1035_vm3, %v1074_v32, 0.0 }
 0x677   :  { %v1076_v36 = vrot.slane %v1075_v34, 4  ;;  %v1083_v37 = vrot.slane %v1082_v35, 4 }
 0x679   :  { %v1077_v48 = vadd.f32 %v1076_v36, %v1075_v34  ;;  %v1084_v38 = vadd.f32 %v1083_v37, %v1082_v35 }
 0x67b   :  { %v1078_v39 = vrot.slane %v1077_v48, 2  ;;  %v1085_v40 = vrot.slane %v1084_v38, 2 }
 0x67d   :  { %v1079_v41 = vadd.f32 %v1078_v39, %v1077_v48  ;;  %v1086_v42 = vadd.f32 %v1085_v40, %v1084_v38 }
 0x67f   :  { %v1080_v43 = vrot.slane %v1079_v41, 1  ;;  %v1087_v44 = vrot.slane %v1086_v42, 1 }
 0x681   :  { %v1081_v45 = vadd.f32 %v1080_v43, %v1079_v41  ;;  %v1088_v46 = vadd.f32 %v1087_v44, %v1086_v42 }
 0x683   :  { %v1089_v57 = vmul.f32 0.125, %v1081_v45  ;;  %v1090_v26 = vmul.f32 0.125, %v1088_v46 }
 0x685   :  { %v1099_v47 = vsel %vm1098_vm4, %v1090_v26, %v1089_v57 }
 0x686   :  { %1424 = vmatmul.mubr.msk.f32.vlgmr.msra.gmra.mrb[8].mxu1 %vm1035_vm3, %v1099_v47 }
 0x759   :  { %v1168_v50 = vpop.f32.mrb[8].mxu1 }
 0x75a   :  { %v1169_v51 = vadd.f32 %v1168_v50, %v1095_v49  ;;  %v1425_v52 = vpop.f32.mrb[9].mxu1 }
 0x75c   :  { %1173 = vst.msk [vmem:[#allocation13] sm:$0x3] %vm1172_vm5, %v1169_v51 }
 0x75d   :  { %1765 = shalt.err (!%p1762_p10)
}
 0x75e   :  { %s1766_s26 = scalar_lea.hbm %s2207_s11, 32 }
 0x75f   :  { %p1767_p11 = scmp.ne.s32.totalorder %s2207_s11, %s1766_s26  ;;  %p1770_p12 = scmp.lt.u32.totalorder %s1766_s26, %s2207_s11 }
 0x761   :  { %p1772_p13 = pnand %p1770_p12, %p1767_p11 }
 0x763   :  { %1775 = shalt.err (!%p1772_p13)
}
 0x764   :  { %1183 = dma.vmem_to_hbm [thread:$0]  %s1181_s6, 32, %s2207_s11, [#allocation4]  }
 0x765   :  { %1784 = dma.done.wait [#allocation4], 32  }
 0x766   :  { %1785 = vsyncadd [#allocation4], 4294967264 }
 0x767   :  { %1187 = vsyncpa [#allocation3], 1 }
 0x768   :  { %1188 = vsyncpa [#allocation6], 1 }
 0x769   :  { %1189 = vsyncpa [#allocation9], 1 }
 0x76a   :  { %1190 = vsyncpa [#allocation12], 1 }
 0x76b   :  { %1191 = vsyncpa [#allocation4], 1 }

</bundles_post_ra>
